<compile_context>
chip_gen: v7x
topology: tpu7x:2x2x1
jax: 0.10.0
libtpu: 0.0.40
codegen_flags: <defaults>
</compile_context>

<pallas_src>
import jax
import jax.numpy as jnp
from jax.experimental import pallas as pl
from jax.experimental.pallas import tpu as pltpu


def _round_up(n, m):
    return ((n + m - 1) // m) * m


def _ffn_kernel(x_ref, w1_ref, b1_ref, w2_ref, b2_ref, o_ref):
    # x_ref:  (TM, d_hid_p)          token tile (lane-dense)
    # w1_ref: (d_hid_p, d_inner_p)   pre-transposed conv1 weight
    # b1_ref: (1, d_inner_p)         f32
    # w2_ref: (d_inner_p, d_out_p)   pre-transposed conv2 weight
    # b2_ref: (1, d_out_p)           f32
    x = x_ref[...]
    h = jnp.dot(x, w1_ref[...], preferred_element_type=jnp.float32)
    h = jnp.maximum(h + b1_ref[...], 0.0)                 # bias + ReLU in f32 (VPU)
    o = jnp.dot(h.astype(w2_ref.dtype), w2_ref[...],
                preferred_element_type=jnp.float32) + b2_ref[...]
    # Dropout(p=0) is the identity -> nothing to do.
    o_ref[...] = o.astype(o_ref.dtype)


def pointwise_feed_forward(x, w1, b1, w2, b2, *, tm=512, compute_dtype=None):
    """x: (B, L, d_hid); w1: (d_inner, d_hid, 1), b1: (d_inner,);
    w2: (d_out, d_inner, 1), b2: (d_out,).

    compute_dtype: optionally cast x / weights (e.g. jnp.bfloat16 on v6e/v7x);
    accumulation and bias/ReLU stay in f32, output returns in x.dtype.
    """
    B, L, d_hid = x.shape
    d_inner = w1.shape[0]
    d_out = w2.shape[0]
    T = B * L
    out_dtype = x.dtype

    # Lane-dense channel dims (multiples of 128).
    dh_p = _round_up(d_hid, 128)
    di_p = _round_up(d_inner, 128)
    do_p = _round_up(d_out, 128)

    # MXU-aligned token tile; shrink if the VMEM budget would blow up.
    tm_eff = min(_round_up(max(tm, 256), 256), _round_up(T, 256))

    def vmem_need(t):
        # 2x double-buffered x tile + 2x out tile + intermediate h + weights (worst case 2x).
        return ((2 * t * dh_p + 2 * t * do_p + 2 * t * di_p) * 4
                + 2 * (dh_p * di_p + di_p * do_p + di_p + do_p) * 4)

    while tm_eff > 256 and vmem_need(tm_eff) > (40 << 20):
        tm_eff -= 256
    T_pad = _round_up(T, tm_eff)
    grid = (T_pad // tm_eff,)

    # Pad tokens + channels with zeros (zero rows/cols are exact no-ops for the math).
    x2d = jnp.pad(x.reshape(T, d_hid), ((0, T_pad - T), (0, dh_p - d_hid)))
    w1_t = jnp.pad(jnp.transpose(w1[:, :, 0]),
                   ((0, dh_p - d_hid), (0, di_p - d_inner)))     # (dh_p, di_p)
    w2_t = jnp.pad(jnp.transpose(w2[:, :, 0]),
                   ((0, di_p - d_inner), (0, do_p - d_out)))     # (di_p, do_p)
    b1_2d = jnp.pad(b1.reshape(1, d_inner),
                    ((0, 0), (0, di_p - d_inner))).astype(jnp.float32)
    b2_2d = jnp.pad(b2.reshape(1, d_out),
                    ((0, 0), (0, do_p - d_out))).astype(jnp.float32)

    if compute_dtype is not None:
        x2d = x2d.astype(compute_dtype)
        w1_t = w1_t.astype(compute_dtype)
        w2_t = w2_t.astype(compute_dtype)

    vmem_limit = int(min(max(vmem_need(tm_eff) * 3 // 2 + (2 << 20), 16 << 20),
                         64 << 20))

    itemsize = jnp.dtype(x2d.dtype).itemsize
    flops = 2 * T_pad * dh_p * di_p + 2 * T_pad * di_p * do_p
    bytes_accessed = ((x2d.size + w1_t.size + w2_t.size) * itemsize
                      + (b1_2d.size + b2_2d.size) * 4
                      + T_pad * do_p * jnp.dtype(out_dtype).itemsize)
    cost = pl.CostEstimate(flops=flops, transcendentals=0,
                           bytes_accessed=bytes_accessed)

    def run(weight_pipeline_mode):
        def const_spec(shape):
            # Grid-invariant operand (index_map is constant).
            if weight_pipeline_mode is None:
                return pl.BlockSpec(shape, lambda i: (0, 0))
            return pl.BlockSpec(shape, lambda i: (0, 0),
                                pipeline_mode=weight_pipeline_mode)

        return pl.pallas_call(
            _ffn_kernel,
            out_shape=jax.ShapeDtypeStruct((T_pad, do_p), out_dtype),
            grid_spec=pltpu.PrefetchScalarGridSpec(
                num_scalar_prefetch=0,
                grid=grid,
                in_specs=[
                    pl.BlockSpec((tm_eff, dh_p), lambda i: (i, 0)),
                    const_spec((dh_p, di_p)),
                    const_spec((1, di_p)),
                    const_spec((di_p, do_p)),
                    const_spec((1, do_p)),
                ],
                out_specs=pl.BlockSpec((tm_eff, do_p), lambda i: (i, 0)),
            ),
            compiler_params=pltpu.CompilerParams(
                dimension_semantics=("parallel",),
                vmem_limit_bytes=vmem_limit,
            ),
            cost_estimate=cost,
        )(x2d, w1_t, b1_2d, w2_t, b2_2d)

    try:
        # Single-buffer the grid-invariant weights/biases (halves their VMEM).
        pm = pl.Buffered(1) if hasattr(pl, "Buffered") else None
        out2d = jax.block_until_ready(run(pm))
    except Exception:
        # Fallback: default (double-buffered) specs if pipeline_mode is unsupported.
        out2d = run(None)

    return out2d[:T, :d_out].reshape(B, L, d_out)


def _reference(x, w1, b1, w2, b2):
    # Pure-JAX mirror of the PyTorch forward (dropout p=0 -> identity).
    h = jnp.einsum("bld,od->blo", x, w1[:, :, 0]) + b1
    h = jnp.maximum(h, 0.0)
    o = jnp.einsum("bli,oi->blo", h, w2[:, :, 0]) + b2
    return o


if __name__ == "__main__":
    # Small shapes consistent with the module: batch=2, seq=8, d_hid=32.
    B, L = 2, 8
    d_hid = 32
    d_inner = d_hid       # default d_inner_hid = d_hid
    d_out = d_inner       # default d_out = d_inner_hid

    key = jax.random.PRNGKey(0)
    kx, kw1, kb1, kw2, kb2 = jax.random.split(key, 5)

    x = jax.random.normal(kx, (B, L, d_hid), dtype=jnp.float32)
    # Conv1d parameter shapes: weight (out, in, 1), bias (out,)
    w1 = jax.random.normal(kw1, (d_inner, d_hid, 1), dtype=jnp.float32) * 0.1
    b1 = jax.random.normal(kb1, (d_inner,), dtype=jnp.float32) * 0.1
    w2 = jax.random.normal(kw2, (d_out, d_inner, 1), dtype=jnp.float32) * 0.1
    b2 = jax.random.normal(kb2, (d_out,), dtype=jnp.float32) * 0.1

    out = pointwise_feed_forward(x, w1, b1, w2, b2)
    out = jax.block_until_ready(out)

    ref = _reference(x, w1, b1, w2, b2)
    assert out.shape == (B, L, d_out), out.shape
    assert jnp.allclose(out, ref, atol=1e-5, rtol=1e-5), "mismatch vs reference"

    print("KERNEL_OK")
</pallas_src>

<mosaic_0001>
module attributes {stable_mosaic.version = 11 : i64} {
  func.func @_ffn_kernel(%arg0: i32, %arg1: memref<256x128xf32, #tpu.memory_space<vmem>>, %arg2: memref<128x128xf32, #tpu.memory_space<vmem>>, %arg3: memref<1x128xf32, #tpu.memory_space<vmem>>, %arg4: memref<128x128xf32, #tpu.memory_space<vmem>>, %arg5: memref<1x128xf32, #tpu.memory_space<vmem>>, %arg6: memref<256x128xf32, #tpu.memory_space<vmem>>) attributes {dimension_semantics = [#tpu.dimension_semantics<parallel>], iteration_bounds = array<i64: 1>, scalar_prefetch = 0 : i64, scratch_operands = 0 : i64, tpu.core_type = #tpu.core_type<tc>, window_params = [{transform_indices = @transform_0, window_bounds = array<i64: 256, 128>}, {pipeline_mode = #tpu.pipeline_mode<synchronous>, transform_indices = @transform_1, window_bounds = array<i64: 128, 128>}, {pipeline_mode = #tpu.pipeline_mode<synchronous>, transform_indices = @transform_2, window_bounds = array<i64: 1, 128>}, {pipeline_mode = #tpu.pipeline_mode<synchronous>, transform_indices = @transform_3, window_bounds = array<i64: 128, 128>}, {pipeline_mode = #tpu.pipeline_mode<synchronous>, transform_indices = @transform_4, window_bounds = array<i64: 1, 128>}, {transform_indices = @transform_5, window_bounds = array<i64: 256, 128>}]} {
    %c0 = arith.constant 0 : index
    %c0_0 = arith.constant 0 : index
    %0 = vector.load %arg1[%c0, %c0_0] : memref<256x128xf32, #tpu.memory_space<vmem>>, vector<256x128xf32>
    %c0_1 = arith.constant 0 : index
    %c0_2 = arith.constant 0 : index
    %1 = vector.load %arg2[%c0_1, %c0_2] : memref<128x128xf32, #tpu.memory_space<vmem>>, vector<128x128xf32>
    %cst = arith.constant dense<0.000000e+00> : vector<256x128xf32>
    %2 = tpu.matmul %0, %1, %cst {dimension_numbers = #tpu.dot_dimension_numbers<[1], [0], [0], [1], [0, 0, 1, 1], [], []>} : vector<256x128xf32>, vector<128x128xf32>, vector<256x128xf32> -> vector<256x128xf32>
    %c0_3 = arith.constant 0 : index
    %c0_4 = arith.constant 0 : index
    %3 = vector.load %arg3[%c0_3, %c0_4] : memref<1x128xf32, #tpu.memory_space<vmem>>, vector<1x128xf32>
    %4 = vector.broadcast %3 : vector<1x128xf32> to vector<256x128xf32>
    %5 = arith.addf %2, %4 : vector<256x128xf32>
    %cst_5 = arith.constant 0.000000e+00 : f32
    %6 = vector.broadcast %cst_5 : f32 to vector<256x128xf32>
    %7 = arith.maximumf %5, %6 : vector<256x128xf32>
    %c0_6 = arith.constant 0 : index
    %c0_7 = arith.constant 0 : index
    %8 = vector.load %arg4[%c0_6, %c0_7] : memref<128x128xf32, #tpu.memory_space<vmem>>, vector<128x128xf32>
    %cst_8 = arith.constant dense<0.000000e+00> : vector<256x128xf32>
    %9 = tpu.matmul %7, %8, %cst_8 {dimension_numbers = #tpu.dot_dimension_numbers<[1], [0], [0], [1], [0, 0, 1, 1], [], []>} : vector<256x128xf32>, vector<128x128xf32>, vector<256x128xf32> -> vector<256x128xf32>
    %c0_9 = arith.constant 0 : index
    %c0_10 = arith.constant 0 : index
    %10 = vector.load %arg5[%c0_9, %c0_10] : memref<1x128xf32, #tpu.memory_space<vmem>>, vector<1x128xf32>
    %11 = vector.broadcast %10 : vector<1x128xf32> to vector<256x128xf32>
    %12 = arith.addf %9, %11 : vector<256x128xf32>
    %c0_11 = arith.constant 0 : index
    %c0_12 = arith.constant 0 : index
    %13 = vector.load %arg6[%c0_11, %c0_12] : memref<256x128xf32, #tpu.memory_space<vmem>>, vector<256x128xf32>
    tpu.vector_store %arg6[%c0_11, %c0_12], %12 {strides = array<i32>} : memref<256x128xf32, #tpu.memory_space<vmem>>, vector<256x128xf32>,
    return
  }
  func.func @transform_0(%arg0: i32) -> (i32, i32) {
    %c0_i32 = arith.constant 0 : i32
    %c0_i32_0 = arith.constant 0 : i32
    return %arg0, %c0_i32 : i32, i32
  }
  func.func @transform_1(%arg0: i32) -> (i32, i32) {
    %c0_i32 = arith.constant 0 : i32
    %c0_i32_0 = arith.constant 0 : i32
    %c0_i32_1 = arith.constant 0 : i32
    return %c0_i32, %c0_i32_0 : i32, i32
  }
  func.func @transform_2(%arg0: i32) -> (i32, i32) {
    %c0_i32 = arith.constant 0 : i32
    %c0_i32_0 = arith.constant 0 : i32
    %c0_i32_1 = arith.constant 0 : i32
    return %c0_i32, %c0_i32_0 : i32, i32
  }
  func.func @transform_3(%arg0: i32) -> (i32, i32) {
    %c0_i32 = arith.constant 0 : i32
    %c0_i32_0 = arith.constant 0 : i32
    %c0_i32_1 = arith.constant 0 : i32
    return %c0_i32, %c0_i32_0 : i32, i32
  }
  func.func @transform_4(%arg0: i32) -> (i32, i32) {
    %c0_i32 = arith.constant 0 : i32
    %c0_i32_0 = arith.constant 0 : i32
    %c0_i32_1 = arith.constant 0 : i32
    return %c0_i32, %c0_i32_0 : i32, i32
  }
  func.func @transform_5(%arg0: i32) -> (i32, i32) {
    %c0_i32 = arith.constant 0 : i32
    %c0_i32_0 = arith.constant 0 : i32
    return %arg0, %c0_i32 : i32, i32
  }
}

module attributes {stable_mosaic.version = 11 : i64} {
  func.func @_ffn_kernel(%arg0: i32, %arg1: memref<256x128xf32, #tpu.memory_space<vmem>>, %arg2: memref<128x128xf32, #tpu.memory_space<vmem>>, %arg3: memref<1x128xf32, #tpu.memory_space<vmem>>, %arg4: memref<128x128xf32, #tpu.memory_space<vmem>>, %arg5: memref<1x128xf32, #tpu.memory_space<vmem>>, %arg6: memref<256x128xf32, #tpu.memory_space<vmem>>) attributes {dimension_semantics = [#tpu.dimension_semantics<parallel>], iteration_bounds = array<i64: 1>, scalar_prefetch = 0 : i64, scratch_operands = 0 : i64, tpu.core_type = #tpu.core_type<tc>, window_params = [{transform_indices = @transform_0, window_bounds = array<i64: 256, 128>}, {pipeline_mode = #tpu.pipeline_mode<synchronous>, transform_indices = @transform_1, window_bounds = array<i64: 128, 128>}, {pipeline_mode = #tpu.pipeline_mode<synchronous>, transform_indices = @transform_2, window_bounds = array<i64: 1, 128>}, {pipeline_mode = #tpu.pipeline_mode<synchronous>, transform_indices = @transform_3, window_bounds = array<i64: 128, 128>}, {pipeline_mode = #tpu.pipeline_mode<synchronous>, transform_indices = @transform_4, window_bounds = array<i64: 1, 128>}, {transform_indices = @transform_5, window_bounds = array<i64: 256, 128>}]} {
    %c0 = arith.constant 0 : index
    %c0_0 = arith.constant 0 : index
    %0 = vector.load %arg1[%c0, %c0_0] : memref<256x128xf32, #tpu.memory_space<vmem>>, vector<256x128xf32>
    %c0_1 = arith.constant 0 : index
    %c0_2 = arith.constant 0 : index
    %1 = vector.load %arg2[%c0_1, %c0_2] : memref<128x128xf32, #tpu.memory_space<vmem>>, vector<128x128xf32>
    %cst = arith.constant dense<0.000000e+00> : vector<256x128xf32>
    %2 = tpu.matmul %0, %1, %cst {dimension_numbers = #tpu.dot_dimension_numbers<[1], [0], [0], [1], [0, 0, 1, 1], [], []>} : vector<256x128xf32>, vector<128x128xf32>, vector<256x128xf32> -> vector<256x128xf32>
    %c0_3 = arith.constant 0 : index
    %c0_4 = arith.constant 0 : index
    %3 = vector.load %arg3[%c0_3, %c0_4] : memref<1x128xf32, #tpu.memory_space<vmem>>, vector<1x128xf32>
    %4 = vector.broadcast %3 : vector<1x128xf32> to vector<256x128xf32>
    %5 = arith.addf %2, %4 : vector<256x128xf32>
    %cst_5 = arith.constant 0.000000e+00 : f32
    %6 = vector.broadcast %cst_5 : f32 to vector<256x128xf32>
    %7 = arith.maximumf %5, %6 : vector<256x128xf32>
    %c0_6 = arith.constant 0 : index
    %c0_7 = arith.constant 0 : index
    %8 = vector.load %arg4[%c0_6, %c0_7] : memref<128x128xf32, #tpu.memory_space<vmem>>, vector<128x128xf32>
    %cst_8 = arith.constant dense<0.000000e+00> : vector<256x128xf32>
    %9 = tpu.matmul %7, %8, %cst_8 {dimension_numbers = #tpu.dot_dimension_numbers<[1], [0], [0], [1], [0, 0, 1, 1], [], []>} : vector<256x128xf32>, vector<128x128xf32>, vector<256x128xf32> -> vector<256x128xf32>
    %c0_9 = arith.constant 0 : index
    %c0_10 = arith.constant 0 : index
    %10 = vector.load %arg5[%c0_9, %c0_10] : memref<1x128xf32, #tpu.memory_space<vmem>>, vector<1x128xf32>
    %11 = vector.broadcast %10 : vector<1x128xf32> to vector<256x128xf32>
    %12 = arith.addf %9, %11 : vector<256x128xf32>
    %c0_11 = arith.constant 0 : index
    %c0_12 = arith.constant 0 : index
    %13 = vector.load %arg6[%c0_11, %c0_12] : memref<256x128xf32, #tpu.memory_space<vmem>>, vector<256x128xf32>
    tpu.vector_store %arg6[%c0_11, %c0_12], %12 {strides = array<i32>} : memref<256x128xf32, #tpu.memory_space<vmem>>, vector<256x128xf32>,
    return
  }
  func.func @transform_0(%arg0: i32) -> (i32, i32) {
    %c0_i32 = arith.constant 0 : i32
    %c0_i32_0 = arith.constant 0 : i32
    return %arg0, %c0_i32 : i32, i32
  }
  func.func @transform_1(%arg0: i32) -> (i32, i32) {
    %c0_i32 = arith.constant 0 : i32
    %c0_i32_0 = arith.constant 0 : i32
    %c0_i32_1 = arith.constant 0 : i32
    return %c0_i32, %c0_i32_0 : i32, i32
  }
  func.func @transform_2(%arg0: i32) -> (i32, i32) {
    %c0_i32 = arith.constant 0 : i32
    %c0_i32_0 = arith.constant 0 : i32
    %c0_i32_1 = arith.constant 0 : i32
    return %c0_i32, %c0_i32_0 : i32, i32
  }
  func.func @transform_3(%arg0: i32) -> (i32, i32) {
    %c0_i32 = arith.constant 0 : i32
    %c0_i32_0 = arith.constant 0 : i32
    %c0_i32_1 = arith.constant 0 : i32
    return %c0_i32, %c0_i32_0 : i32, i32
  }
  func.func @transform_4(%arg0: i32) -> (i32, i32) {
    %c0_i32 = arith.constant 0 : i32
    %c0_i32_0 = arith.constant 0 : i32
    %c0_i32_1 = arith.constant 0 : i32
    return %c0_i32, %c0_i32_0 : i32, i32
  }
  func.func @transform_5(%arg0: i32) -> (i32, i32) {
    %c0_i32 = arith.constant 0 : i32
    %c0_i32_0 = arith.constant 0 : i32
    return %arg0, %c0_i32 : i32, i32
  }
}

</mosaic_0001>

<bundles_post_ra>
// kernel: tpu_custom_call.1
= control target key start
LH: loop header
LB: loop body
LE: loop exit
PB: predicated region body
PF: predicated region fallthrough
CT: control target
= control target key end

     0   :  { %10 = vsyncpa [#allocation3], 0  ;;  %s1271_s0 = inlined_call_operand.hbm [shape: f32[256,128], index: 0, kind: input, shape index: {}]   ;;  %s1272_s1 = inlined_call_operand.hbm [shape: f32[128,128], index: 1, kind: input, shape index: {}]   ;;  %s1273_s2 = inlined_call_operand.vmem [shape: f32[1,128], index: 2, kind: input, shape index: {}]   ;;  %s1274_s3 = inlined_call_operand.hbm [shape: f32[128,128], index: 3, kind: input, shape index: {}]   ;;  %s1275_s4 = inlined_call_operand.vmem [shape: f32[1,128], index: 4, kind: input, shape index: {}]   ;;  %s1276_s5 = inlined_call_operand.hbm [shape: f32[256,128], index: 5, kind: output, shape index: {}]  }
   0x1   :  { %11 = vsyncpa [#allocation6], 0 }
   0x2   :  { %12 = vsyncpa [#allocation4], 0  ;;  %s1094_s18 = smov [#allocation5]   ;;  %s1095_s20 = smov [#allocation2]  }
   0x3   :  { %s30_s19 = sshll.u32 %s1094_s18, 4  ;;  %s18_s21 = sshll.u32 %s1095_s20, 4  ;;  %s31_s19 = int_to_ptr.vmem [resolvable:$true] %s30_s19  ;;  %s1130_s21 = int_to_ptr.vmem [resolvable:$true] %s18_s21 }
   0x4   :  { %s1000_s24 = scalar_lea.hbm %s1272_s1, 2048 }
   0x5   :  { %p1001_p0 = scmp.ne.s32.totalorder %s1272_s1, %s1000_s24  ;;  %p1004_p1 = scmp.lt.u32.totalorder %s1000_s24, %s1272_s1 }
   0x7   :  { %p1006_p2 = pnand %p1004_p1, %p1001_p0 }
   0x9   :  { %1009 = shalt.err (!%p1006_p2)
}
   0xa   :  { %s1010_s29 = scalar_lea.vmem %s31_s19, 2048  ;;  %p1015_p4 = scmp.lt.s32.totalorder %s31_s19, %s31_s19 }
   0xb   :  { %p1011_p3 = scmp.ne.s32.totalorder %s31_s19, %s1010_s29  ;;  %p1016_p5 = scmp.lt.s32.totalorder %s1010_s29, %s1010_s29 }
   0xd   :  { %p1017_p6 = por %p1016_p5, %p1015_p4 }
   0xf   :  { %p1018_p7 = pnand %p1017_p6, %p1011_p3 }
  0x11   :  { %1021 = shalt.err (!%p1018_p7)
}
  0x12   :  { %s1096_s30 = smov 128   ;;  %s1097_s6 = smov 8  }
  0x13   :  { %36 = dma.hbm_to_vmem [thread:$0]  %s1272_s1, 2048, %s31_s19, [#allocation6], %s1096_s30, %s1096_s30, %s1097_s6  }
  0x14   :  { %s1022_s11 = scalar_lea.hbm %s1271_s0, 4096 }
  0x15   :  { %p1023_p8 = scmp.ne.s32.totalorder %s1271_s0, %s1022_s11  ;;  %p1026_p9 = scmp.lt.u32.totalorder %s1022_s11, %s1271_s0 }
  0x17   :  { %p1028_p10 = pnand %p1026_p9, %p1023_p8 }
  0x19   :  { %1031 = shalt.err (!%p1028_p10)
}
  0x1a   :  { %s1032_s16 = scalar_lea.vmem %s1130_s21, 4096  ;;  %p1037_p12 = scmp.lt.s32.totalorder %s1130_s21, %s1130_s21 }
  0x1b   :  { %p1033_p11 = scmp.ne.s32.totalorder %s1130_s21, %s1032_s16  ;;  %p1038_p13 = scmp.lt.s32.totalorder %s1032_s16, %s1032_s16 }
  0x1d   :  { %p1039_p0 = por %p1038_p13, %p1037_p12 }
  0x1f   :  { %p1040_p1 = pnand %p1039_p0, %p1033_p11 }
  0x21   :  { %1043 = shalt.err (!%p1040_p1)
}
  0x22   :  { %24 = dma.hbm_to_vmem [thread:$0]  %s1271_s0, 4096, %s1130_s21, [#allocation3], %s1096_s30, %s1096_s30, %s1097_s6  }
  0x23   :  { %s1098_s18 = smov [#allocation7]   ;;  %s1044_s23 = scalar_lea.hbm %s1274_s3, 2048 }
  0x24   :  { %s44_s19 = sshll.u32 %s1098_s18, 4  ;;  %p1045_p2 = scmp.ne.s32.totalorder %s1274_s3, %s1044_s23  ;;  %s45_s19 = int_to_ptr.vmem [resolvable:$true] %s44_s19 }
  0x25   :  { %p1048_p3 = scmp.lt.u32.totalorder %s1044_s23, %s1274_s3 }
  0x27   :  { %p1050_p4 = pnand %p1048_p3, %p1045_p2 }
  0x29   :  { %1053 = shalt.err (!%p1050_p4)
}
  0x2a   :  { %s1054_s28 = scalar_lea.vmem %s45_s19, 2048  ;;  %p1059_p6 = scmp.lt.s32.totalorder %s45_s19, %s45_s19 }
  0x2b   :  { %p1055_p5 = scmp.ne.s32.totalorder %s45_s19, %s1054_s28  ;;  %p1060_p7 = scmp.lt.s32.totalorder %s1054_s28, %s1054_s28 }
  0x2d   :  { %p1061_p8 = por %p1060_p7, %p1059_p6 }
  0x2f   :  { %p1062_p9 = pnand %p1061_p8, %p1055_p5 }
  0x31   :  { %1065 = shalt.err (!%p1062_p9)
}
  0x32   :  { %50 = dma.hbm_to_vmem [thread:$0]  %s1274_s3, 2048, %s45_s19, [#allocation6], %s1096_s30, %s1096_s30, %s1097_s6  }
  0x33   :  { %1088 = dma.done.wait [#allocation3], 4096  }
  0x34   :  { %1089 = vsyncadd [#allocation3], 4294963200 }
  0x35   :  { %1090 = dma.done.wait [#allocation6], 4096  }
  0x36   :  { %1091 = vsyncadd [#allocation6], 4294963200  ;;  %v94_v0 = vld [vmem:[#allocation5] sm:$0xff]  ;;  %v95_v1 = vld [vmem:[#allocation5 + $0x8] sm:$0xff] }
  0x37   :  { %v96_v2 = vld [vmem:[#allocation5 + $0x10] sm:$0xff]  ;;  %v930_v3 = vpack.c.bf16 %v95_v1, %v94_v0  ;;  %v97_v4 = vld [vmem:[#allocation5 + $0x18] sm:$0xff]  ;;  %v98_v6 = vld [vmem:[#allocation5 + $0x20] sm:$0xff] }
  0x38   :  { %v934_v5 = vpack.c.bf16 %v97_v4, %v96_v2  ;;  %v99_v7 = vld [vmem:[#allocation5 + $0x28] sm:$0xff]  ;;  %v62_v9 = vld [vmem:[#allocation2] sm:$0xff]  ;;  %v100_v10 = vld [vmem:[#allocation5 + $0x30] sm:$0xff] }
  0x39   :  { %931 = vmatprep.subr.bf16.mxu0 %v930_v3  ;;  %v938_v8 = vpack.c.bf16 %v99_v7, %v98_v6  ;;  %v101_v11 = vld [vmem:[#allocation5 + $0x38] sm:$0xff]  ;;  %802 = vmatprep.mubr.f32.mxu0 %v62_v9  ;;  %v102_v13 = vld [vmem:[#allocation5 + $0x40] sm:$0xff]  ;;  %v103_v14 = vld [vmem:[#allocation5 + $0x48] sm:$0xff] }
  0x3a   :  { %933 = vmatpush3.bf16.msra.mxu0 %v930_v3  ;;  %v942_v12 = vpack.c.bf16 %v101_v11, %v100_v10  ;;  %v946_v15 = vpack.c.bf16 %v103_v14, %v102_v13  ;;  %v104_v16 = vld [vmem:[#allocation5 + $0x50] sm:$0xff]  ;;  %v105_v17 = vld [vmem:[#allocation5 + $0x58] sm:$0xff]  ;;  %v374_v18 = vld [vmem:[#allocation7] sm:$0xff] }
  0x3b   :  { %935 = vmatprep.subr.bf16.mxu0 %v934_v5  ;;  %v375_v19 = vld [vmem:[#allocation7 + $0x8] sm:$0xff]  ;;  %v376_v20 = vld [vmem:[#allocation7 + $0x10] sm:$0xff]  ;;  %v950_v21 = vpack.c.bf16 %v105_v17, %v104_v16  ;;  %v106_v22 = vld [vmem:[#allocation5 + $0x60] sm:$0xff] }
  0x3c   :  { %v962_v23 = vpack.c.bf16 %v375_v19, %v374_v18  ;;  %v377_v24 = vld [vmem:[#allocation7 + $0x18] sm:$0xff]  ;;  %v107_v25 = vld [vmem:[#allocation5 + $0x68] sm:$0xff]  ;;  %v378_v27 = vld [vmem:[#allocation7 + $0x20] sm:$0xff] }
  0x3d   :  { %v966_v26 = vpack.c.bf16 %v377_v24, %v376_v20  ;;  %v379_v28 = vld [vmem:[#allocation7 + $0x28] sm:$0xff]  ;;  %v954_v29 = vpack.c.bf16 %v107_v25, %v106_v22  ;;  %v108_v30 = vld [vmem:[#allocation5 + $0x70] sm:$0xff]  ;;  %v109_v32 = vld [vmem:[#allocation5 + $0x78] sm:$0xff] }
  0x3e   :  { %937 = vmatpush3.bf16.msra.mxu0 %v934_v5  ;;  %963 = vmatprep.subr.bf16.mxu1 %v962_v23  ;;  %v970_v31 = vpack.c.bf16 %v379_v28, %v378_v27  ;;  %v380_v33 = vld [vmem:[#allocation7 + $0x30] sm:$0xff]  ;;  %v381_v34 = vld [vmem:[#allocation7 + $0x38] sm:$0xff]  ;;  %v958_v35 = vpack.c.bf16 %v109_v32, %v108_v30  ;;  %v382_v37 = vld [vmem:[#allocation7 + $0x40] sm:$0xff] }
  0x3f   :  { %939 = vmatprep.subr.bf16.mxu0 %v938_v8  ;;  %965 = vmatpush3.bf16.msra.mxu1 %v962_v23  ;;  %v974_v36 = vpack.c.bf16 %v381_v34, %v380_v33  ;;  %v383_v38 = vld [vmem:[#allocation7 + $0x48] sm:$0xff]  ;;  %v384_v40 = vld [vmem:[#allocation7 + $0x50] sm:$0xff]  ;;  %v385_v41 = vld [vmem:[#allocation7 + $0x58] sm:$0xff] }
  0x40   :  { %967 = vmatprep.subr.bf16.mxu1 %v966_v26  ;;  %v978_v39 = vpack.c.bf16 %v383_v38, %v382_v37  ;;  %v63_v42 = vld [vmem:[#allocation2 + $0x8] sm:$0xff]  ;;  %v64_v43 = vld [vmem:[#allocation2 + $0x10] sm:$0xff]  ;;  %v982_v44 = vpack.c.bf16 %v385_v41, %v384_v40  ;;  %v386_v45 = vld [vmem:[#allocation7 + $0x60] sm:$0xff] }
  0x41   :  { %v387_v46 = vld [vmem:[#allocation7 + $0x68] sm:$0xff]  ;;  %v65_v47 = vld [vmem:[#allocation2 + $0x18] sm:$0xff]  ;;  %v66_v48 = vld [vmem:[#allocation2 + $0x20] sm:$0xff] }
  0x42   :  { %941 = vmatpush3.bf16.msra.mxu0 %v938_v8  ;;  %v986_v49 = vpack.c.bf16 %v387_v46, %v386_v45  ;;  %v67_v50 = vld [vmem:[#allocation2 + $0x28] sm:$0xff]  ;;  %v68_v51 = vld [vmem:[#allocation2 + $0x30] sm:$0xff]  ;;  %v69_v52 = vld [vmem:[#allocation2 + $0x38] sm:$0xff] }
  0x43   :  { %943 = vmatprep.subr.bf16.mxu0 %v942_v12  ;;  %969 = vmatpush3.bf16.msra.mxu1 %v966_v26  ;;  %v70_v53 = vld [vmem:[#allocation2 + $0x40] sm:$0xff]  ;;  %v71_v54 = vld [vmem:[#allocation2 + $0x48] sm:$0xff]  ;;  %v72_v55 = vld [vmem:[#allocation2 + $0x50] sm:$0xff] }
  0x44   :  { %971 = vmatprep.subr.bf16.mxu1 %v970_v31  ;;  %v73_v56 = vld [vmem:[#allocation2 + $0x58] sm:$0xff]  ;;  %v74_v57 = vld [vmem:[#allocation2 + $0x60] sm:$0xff]  ;;  %v75_v58 = vld [vmem:[#allocation2 + $0x68] sm:$0xff] }
  0x45   :  { %v76_v59 = vld [vmem:[#allocation2 + $0x70] sm:$0xff]  ;;  %v77_v60 = vld [vmem:[#allocation2 + $0x78] sm:$0xff]  ;;  %v78_v61 = vld [vmem:[#allocation2 + $0x80] sm:$0xff] }
  0x46   :  { %945 = vmatpush3.bf16.msra.mxu0 %v942_v12  ;;  %v79_v62 = vld [vmem:[#allocation2 + $0x88] sm:$0xff]  ;;  %v80_v63 = vld [vmem:[#allocation2 + $0x90] sm:$0xff]  ;;  %v81_v0 = vld [vmem:[#allocation2 + $0x98] sm:$0xff] }
  0x47   :  { %947 = vmatprep.subr.bf16.mxu0 %v946_v15  ;;  %973 = vmatpush3.bf16.msra.mxu1 %v970_v31  ;;  %v82_v1 = vld [vmem:[#allocation2 + $0xa0] sm:$0xff]  ;;  %v83_v2 = vld [vmem:[#allocation2 + $0xa8] sm:$0xff]  ;;  %v84_v3 = vld [vmem:[#allocation2 + $0xb0] sm:$0xff] }
  0x48   :  { %975 = vmatprep.subr.bf16.mxu1 %v974_v36  ;;  %v85_v4 = vld [vmem:[#allocation2 + $0xb8] sm:$0xff]  ;;  %v86_v5 = vld [vmem:[#allocation2 + $0xc0] sm:$0xff]  ;;  %v87_v6 = vld [vmem:[#allocation2 + $0xc8] sm:$0xff] }
  0x49   :  { %v88_v7 = vld [vmem:[#allocation2 + $0xd0] sm:$0xff]  ;;  %v89_v8 = vld [vmem:[#allocation2 + $0xd8] sm:$0xff]  ;;  %v90_v9 = vld [vmem:[#allocation2 + $0xe0] sm:$0xff] }
  0x4a   :  { %949 = vmatpush3.bf16.msra.mxu0 %v946_v15  ;;  %v91_v10 = vld [vmem:[#allocation2 + $0xe8] sm:$0xff]  ;;  %v92_v11 = vld [vmem:[#allocation2 + $0xf0] sm:$0xff]  ;;  %v93_v12 = vld [vmem:[#allocation2 + $0xf8] sm:$0xff] }
  0x4b   :  { %951 = vmatprep.subr.bf16.mxu0 %v950_v21  ;;  %977 = vmatpush3.bf16.msra.mxu1 %v974_v36  ;;  %v388_v13 = vld [vmem:[#allocation7 + $0x70] sm:$0xff]  ;;  %v389_v14 = vld [vmem:[#allocation7 + $0x78] sm:$0xff]  ;;  %v1185_v16 = vld [vmem:[%s1273_s2] ss:$0 sm:$0xff] }
  0x4c   :  { %979 = vmatprep.subr.bf16.mxu1 %v978_v39  ;;  %v990_v15 = vpack.c.bf16 %v389_v14, %v388_v13 }
  0x4e   :  { %953 = vmatpush3.bf16.msra.mxu0 %v950_v21 }
  0x4f   :  { %955 = vmatprep.subr.bf16.mxu0 %v954_v29  ;;  %981 = vmatpush3.bf16.msra.mxu1 %v978_v39 }
  0x50   :  { %983 = vmatprep.subr.bf16.mxu1 %v982_v44 }
  0x52   :  { %957 = vmatpush3.bf16.msra.mxu0 %v954_v29 }
  0x53   :  { %959 = vmatprep.subr.bf16.mxu0 %v958_v35  ;;  %985 = vmatpush3.bf16.msra.mxu1 %v982_v44 }
  0x54   :  { %987 = vmatprep.subr.bf16.mxu1 %v986_v49 }
  0x56   :  { %961 = vmatpush3.bf16.msra.mxu0 %v958_v35 }
  0x57   :  { %989 = vmatpush3.bf16.msra.mxu1 %v986_v49 }
  0x58   :  { %991 = vmatprep.subr.bf16.mxu1 %v990_v15 }
  0x59   :  { %803 = vmatmul.mubr.f32.vlgmr.msra.gmra.mrb[0].mxu0 %v63_v42 }
  0x5a   :  { %805 = vmatprep.mubr.f32.mxu0 %v64_v43 }
  0x5b   :  { %993 = vmatpush3.bf16.msra.mxu1 %v990_v15 }
  0x5d   :  { %806 = vmatmul.mubr.f32.gmra.mrb[2].mxu0 %v65_v47 }
  0x5e   :  { %808 = vmatprep.mubr.f32.mxu0 %v66_v48 }
  0x61   :  { %809 = vmatmul.mubr.f32.gmra.mrb[4].mxu0 %v67_v50 }
  0x62   :  { %811 = vmatprep.mubr.f32.mxu0 %v68_v51 }
  0x65   :  { %812 = vmatmul.mubr.f32.gmra.mrb[6].mxu0 %v69_v52 }
  0x66   :  { %814 = vmatprep.mubr.f32.mxu0 %v70_v53 }
  0x69   :  { %815 = vmatmul.mubr.f32.gmra.mrb[8].mxu0 %v71_v54 }
  0x6a   :  { %817 = vmatprep.mubr.f32.mxu0 %v72_v55 }
  0x6d   :  { %818 = vmatmul.mubr.f32.gmra.mrb[10].mxu0 %v73_v56 }
  0x6e   :  { %820 = vmatprep.mubr.f32.mxu0 %v74_v57 }
  0x71   :  { %821 = vmatmul.mubr.f32.gmra.mrb[12].mxu0 %v75_v58 }
  0x72   :  { %823 = vmatprep.mubr.f32.mxu0 %v76_v59 }
  0x75   :  { %824 = vmatmul.mubr.f32.gmra.mrb[14].mxu0 %v77_v60 }
  0x76   :  { %826 = vmatprep.mubr.f32.mxu0 %v78_v61 }
  0x79   :  { %827 = vmatmul.mubr.f32.gmra.mrb[16].mxu0 %v79_v62 }
  0x7a   :  { %829 = vmatprep.mubr.f32.mxu0 %v80_v63 }
  0x7d   :  { %830 = vmatmul.mubr.f32.gmra.mrb[18].mxu0 %v81_v0 }
  0x7e   :  { %832 = vmatprep.mubr.f32.mxu0 %v82_v1 }
  0x81   :  { %833 = vmatmul.mubr.f32.gmra.mrb[20].mxu0 %v83_v2 }
  0x82   :  { %835 = vmatprep.mubr.f32.mxu0 %v84_v3 }
  0x85   :  { %836 = vmatmul.mubr.f32.gmra.mrb[22].mxu0 %v85_v4 }
  0x86   :  { %838 = vmatprep.mubr.f32.mxu0 %v86_v5 }
  0x89   :  { %839 = vmatmul.mubr.f32.gmra.mrb[24].mxu0 %v87_v6 }
  0x8a   :  { %841 = vmatprep.mubr.f32.mxu0 %v88_v7 }
  0x8d   :  { %842 = vmatmul.mubr.f32.gmra.mrb[26].mxu0 %v89_v8 }
  0x8e   :  { %844 = vmatprep.mubr.f32.mxu0 %v90_v9 }
  0x91   :  { %845 = vmatmul.mubr.f32.gmra.mrb[28].mxu0 %v91_v10 }
  0x92   :  { %847 = vmatprep.mubr.f32.mxu0 %v92_v11 }
  0x95   :  { %848 = vmatmul.mubr.f32.gmra.mrb[30].mxu0 %v93_v12 }
 0x12c   :  { %v804_v17 = vpop.f32.mrb[0].mxu0 }
 0x12d   :  { %v189_v18 = vadd.f32 %v804_v17, %v1185_v16  ;;  %v183_v19 = vpop.f32.mrb[1].mxu0 }
 0x12e   :  { %v184_v20 = vadd.f32 %v1185_v16, %v183_v19 }
 0x12f   :  { %v343_v23 = vmax.f32 %v189_v18, 0.0 }
 0x130   :  { %v807_v21 = vpop.f32.mrb[2].mxu0  ;;  %v342_v22 = vmax.f32 %v184_v20, 0.0 }
 0x131   :  { %v199_v24 = vadd.f32 %v807_v21, %v1185_v16  ;;  %v193_v25 = vpop.f32.mrb[3].mxu0 }
 0x132   :  { %v194_v26 = vadd.f32 %v1185_v16, %v193_v25  ;;  %882 = vmatprep.mubr.f32.mxu1 %v342_v22 }
 0x133   :  { %883 = vmatmul.mubr.f32.vlgmr.msra.gmra.mrb[0].mxu1 %v343_v23  ;;  %v345_v29 = vmax.f32 %v199_v24, 0.0 }
 0x134   :  { %v344_v27 = vmax.f32 %v194_v26, 0.0  ;;  %v810_v28 = vpop.f32.mrb[4].mxu0 }
 0x135   :  { %v209_v30 = vadd.f32 %v810_v28, %v1185_v16  ;;  %v203_v31 = vpop.f32.mrb[5].mxu0 }
 0x136   :  { %v204_v32 = vadd.f32 %v1185_v16, %v203_v31  ;;  %885 = vmatprep.mubr.f32.mxu1 %v344_v27 }
 0x137   :  { %886 = vmatmul.mubr.f32.gmra.mrb[2].mxu1 %v345_v29  ;;  %v347_v35 = vmax.f32 %v209_v30, 0.0 }
 0x138   :  { %v346_v33 = vmax.f32 %v204_v32, 0.0  ;;  %v813_v34 = vpop.f32.mrb[6].mxu0 }
 0x139   :  { %v219_v36 = vadd.f32 %v813_v34, %v1185_v16  ;;  %v213_v37 = vpop.f32.mrb[7].mxu0 }
 0x13a   :  { %v214_v38 = vadd.f32 %v1185_v16, %v213_v37  ;;  %888 = vmatprep.mubr.f32.mxu1 %v346_v33 }
 0x13b   :  { %889 = vmatmul.mubr.f32.gmra.mrb[4].mxu1 %v347_v35  ;;  %v349_v41 = vmax.f32 %v219_v36, 0.0 }
 0x13c   :  { %v348_v39 = vmax.f32 %v214_v38, 0.0  ;;  %v816_v40 = vpop.f32.mrb[8].mxu0 }
 0x13d   :  { %v229_v42 = vadd.f32 %v816_v40, %v1185_v16  ;;  %v223_v43 = vpop.f32.mrb[9].mxu0 }
 0x13e   :  { %v224_v44 = vadd.f32 %v1185_v16, %v223_v43  ;;  %891 = vmatprep.mubr.f32.mxu1 %v348_v39 }
 0x13f   :  { %892 = vmatmul.mubr.f32.gmra.mrb[6].mxu1 %v349_v41  ;;  %v351_v47 = vmax.f32 %v229_v42, 0.0 }
 0x140   :  { %v350_v45 = vmax.f32 %v224_v44, 0.0  ;;  %v819_v46 = vpop.f32.mrb[10].mxu0 }
 0x141   :  { %v239_v48 = vadd.f32 %v819_v46, %v1185_v16  ;;  %v233_v49 = vpop.f32.mrb[11].mxu0 }
 0x142   :  { %v234_v50 = vadd.f32 %v1185_v16, %v233_v49  ;;  %894 = vmatprep.mubr.f32.mxu1 %v350_v45 }
 0x143   :  { %895 = vmatmul.mubr.f32.gmra.mrb[8].mxu1 %v351_v47  ;;  %v353_v53 = vmax.f32 %v239_v48, 0.0 }
 0x144   :  { %v352_v51 = vmax.f32 %v234_v50, 0.0  ;;  %v822_v52 = vpop.f32.mrb[12].mxu0  ;;  %v1222_v50 = vld [vmem:[%s1275_s4] ss:$0 sm:$0xff]  ;;  %s1099_s4 = smov [#allocation8]  }
 0x145   :  { %v249_v54 = vadd.f32 %v822_v52, %v1185_v16  ;;  %v243_v55 = vpop.f32.mrb[13].mxu0  ;;  %s659_s8 = sshll.u32 %s1099_s4, 4  ;;  %s660_s8 = int_to_ptr.vmem [resolvable:$true] %s659_s8 }
 0x146   :  { %v244_v56 = vadd.f32 %v1185_v16, %v243_v55  ;;  %897 = vmatprep.mubr.f32.mxu1 %v352_v51  ;;  %s1066_s9 = scalar_lea.vmem %s660_s8, 4096  ;;  %p1071_p11 = scmp.lt.s32.totalorder %s660_s8, %s660_s8 }
 0x147   :  { %898 = vmatmul.mubr.f32.gmra.mrb[10].mxu1 %v353_v53  ;;  %v355_v59 = vmax.f32 %v249_v54, 0.0  ;;  %p1067_p10 = scmp.ne.s32.totalorder %s660_s8, %s1066_s9  ;;  %p1072_p12 = scmp.lt.s32.totalorder %s1066_s9, %s1066_s9 }
 0x148   :  { %v354_v57 = vmax.f32 %v244_v56, 0.0  ;;  %v825_v58 = vpop.f32.mrb[14].mxu0 }
 0x149   :  { %v259_v60 = vadd.f32 %v825_v58, %v1185_v16  ;;  %v253_v61 = vpop.f32.mrb[15].mxu0  ;;  %p1073_p13 = por %p1072_p12, %p1071_p11 }
 0x14a   :  { %v254_v62 = vadd.f32 %v1185_v16, %v253_v61  ;;  %900 = vmatprep.mubr.f32.mxu1 %v354_v57 }
 0x14b   :  { %901 = vmatmul.mubr.f32.gmra.mrb[12].mxu1 %v355_v59  ;;  %v357_v1 = vmax.f32 %v259_v60, 0.0  ;;  %p1074_p0 = pnand %p1073_p13, %p1067_p10 }
 0x14c   :  { %v356_v63 = vmax.f32 %v254_v62, 0.0  ;;  %v828_v0 = vpop.f32.mrb[16].mxu0 }
 0x14d   :  { %v269_v2 = vadd.f32 %v828_v0, %v1185_v16  ;;  %v263_v3 = vpop.f32.mrb[17].mxu0 }
 0x14e   :  { %v264_v4 = vadd.f32 %v1185_v16, %v263_v3  ;;  %903 = vmatprep.mubr.f32.mxu1 %v356_v63 }
 0x14f   :  { %904 = vmatmul.mubr.f32.gmra.mrb[14].mxu1 %v357_v1  ;;  %v359_v7 = vmax.f32 %v269_v2, 0.0 }
 0x150   :  { %v358_v5 = vmax.f32 %v264_v4, 0.0  ;;  %v831_v6 = vpop.f32.mrb[18].mxu0 }
 0x151   :  { %v279_v8 = vadd.f32 %v831_v6, %v1185_v16  ;;  %v273_v9 = vpop.f32.mrb[19].mxu0 }
 0x152   :  { %v274_v10 = vadd.f32 %v1185_v16, %v273_v9  ;;  %906 = vmatprep.mubr.f32.mxu1 %v358_v5 }
 0x153   :  { %907 = vmatmul.mubr.f32.gmra.mrb[16].mxu1 %v359_v7  ;;  %v361_v13 = vmax.f32 %v279_v8, 0.0 }
 0x154   :  { %v360_v11 = vmax.f32 %v274_v10, 0.0  ;;  %v834_v12 = vpop.f32.mrb[20].mxu0 }
 0x155   :  { %v289_v14 = vadd.f32 %v834_v12, %v1185_v16  ;;  %v283_v15 = vpop.f32.mrb[21].mxu0 }
 0x156   :  { %v284_v17 = vadd.f32 %v1185_v16, %v283_v15  ;;  %909 = vmatprep.mubr.f32.mxu1 %v360_v11 }
 0x157   :  { %910 = vmatmul.mubr.f32.gmra.mrb[18].mxu1 %v361_v13  ;;  %v363_v20 = vmax.f32 %v289_v14, 0.0 }
 0x158   :  { %v362_v18 = vmax.f32 %v284_v17, 0.0  ;;  %v837_v19 = vpop.f32.mrb[22].mxu0 }
 0x159   :  { %v299_v21 = vadd.f32 %v837_v19, %v1185_v16  ;;  %v293_v22 = vpop.f32.mrb[23].mxu0 }
 0x15a   :  { %v294_v23 = vadd.f32 %v1185_v16, %v293_v22  ;;  %912 = vmatprep.mubr.f32.mxu1 %v362_v18 }
 0x15b   :  { %913 = vmatmul.mubr.f32.gmra.mrb[20].mxu1 %v363_v20  ;;  %v365_v26 = vmax.f32 %v299_v21, 0.0 }
 0x15c   :  { %v364_v24 = vmax.f32 %v294_v23, 0.0  ;;  %v840_v25 = vpop.f32.mrb[24].mxu0 }
 0x15d   :  { %v309_v27 = vadd.f32 %v840_v25, %v1185_v16  ;;  %v303_v28 = vpop.f32.mrb[25].mxu0 }
 0x15e   :  { %v304_v29 = vadd.f32 %v1185_v16, %v303_v28  ;;  %915 = vmatprep.mubr.f32.mxu1 %v364_v24 }
 0x15f   :  { %916 = vmatmul.mubr.f32.gmra.mrb[22].mxu1 %v365_v26  ;;  %v367_v32 = vmax.f32 %v309_v27, 0.0 }
 0x160   :  { %v366_v30 = vmax.f32 %v304_v29, 0.0  ;;  %v843_v31 = vpop.f32.mrb[26].mxu0 }
 0x161   :  { %v319_v33 = vadd.f32 %v843_v31, %v1185_v16  ;;  %v313_v34 = vpop.f32.mrb[27].mxu0 }
 0x162   :  { %v314_v35 = vadd.f32 %v1185_v16, %v313_v34  ;;  %918 = vmatprep.mubr.f32.mxu1 %v366_v30 }
 0x163   :  { %919 = vmatmul.mubr.f32.gmra.mrb[24].mxu1 %v367_v32  ;;  %v369_v38 = vmax.f32 %v319_v33, 0.0 }
 0x164   :  { %v368_v36 = vmax.f32 %v314_v35, 0.0  ;;  %v846_v37 = vpop.f32.mrb[28].mxu0 }
 0x165   :  { %v329_v39 = vadd.f32 %v846_v37, %v1185_v16  ;;  %v323_v40 = vpop.f32.mrb[29].mxu0 }
 0x166   :  { %v324_v41 = vadd.f32 %v1185_v16, %v323_v40  ;;  %921 = vmatprep.mubr.f32.mxu1 %v368_v36 }
 0x167   :  { %922 = vmatmul.mubr.f32.gmra.mrb[26].mxu1 %v369_v38  ;;  %v371_v44 = vmax.f32 %v329_v39, 0.0 }
 0x168   :  { %v370_v42 = vmax.f32 %v324_v41, 0.0  ;;  %v849_v43 = vpop.f32.mrb[30].mxu0 }
 0x169   :  { %v339_v45 = vadd.f32 %v849_v43, %v1185_v16  ;;  %v333_v46 = vpop.f32.mrb[31].mxu0 }
 0x16a   :  { %v334_v47 = vadd.f32 %v1185_v16, %v333_v46  ;;  %924 = vmatprep.mubr.f32.mxu1 %v370_v42 }
 0x16b   :  { %925 = vmatmul.mubr.f32.gmra.mrb[28].mxu1 %v371_v44  ;;  %v373_v49 = vmax.f32 %v339_v45, 0.0 }
 0x16c   :  { %v372_v48 = vmax.f32 %v334_v47, 0.0 }
 0x16e   :  { %927 = vmatprep.mubr.f32.mxu1 %v372_v48 }
 0x16f   :  { %928 = vmatmul.mubr.f32.gmra.mrb[30].mxu1 %v373_v49 }
 0x206   :  { %v884_v51 = vpop.f32.mrb[0].mxu1 }
 0x207   :  { %v469_v52 = vadd.f32 %v884_v51, %v1222_v50  ;;  %v463_v53 = vpop.f32.mrb[1].mxu1 }
 0x208   :  { %v464_v54 = vadd.f32 %v1222_v50, %v463_v53 }
 0x209   :  { %623 = vst [vmem:[#allocation8 + $0x8] sm:$0xff] %v469_v52 }
 0x20a   :  { %622 = vst [vmem:[#allocation8] sm:$0xff] %v464_v54  ;;  %v887_v16 = vpop.f32.mrb[2].mxu1 }
 0x20b   :  { %v479_v55 = vadd.f32 %v887_v16, %v1222_v50  ;;  %v473_v56 = vpop.f32.mrb[3].mxu1 }
 0x20c   :  { %v474_v57 = vadd.f32 %v1222_v50, %v473_v56 }
 0x20d   :  { %625 = vst [vmem:[#allocation8 + $0x18] sm:$0xff] %v479_v55 }
 0x20e   :  { %624 = vst [vmem:[#allocation8 + $0x10] sm:$0xff] %v474_v57  ;;  %v890_v58 = vpop.f32.mrb[4].mxu1 }
 0x20f   :  { %v489_v59 = vadd.f32 %v890_v58, %v1222_v50  ;;  %v483_v60 = vpop.f32.mrb[5].mxu1 }
 0x210   :  { %v484_v61 = vadd.f32 %v1222_v50, %v483_v60 }
 0x211   :  { %627 = vst [vmem:[#allocation8 + $0x28] sm:$0xff] %v489_v59 }
 0x212   :  { %626 = vst [vmem:[#allocation8 + $0x20] sm:$0xff] %v484_v61  ;;  %v893_v62 = vpop.f32.mrb[6].mxu1 }
 0x213   :  { %v499_v63 = vadd.f32 %v893_v62, %v1222_v50  ;;  %v493_v0 = vpop.f32.mrb[7].mxu1 }
 0x214   :  { %v494_v1 = vadd.f32 %v1222_v50, %v493_v0 }
 0x215   :  { %629 = vst [vmem:[#allocation8 + $0x38] sm:$0xff] %v499_v63 }
 0x216   :  { %628 = vst [vmem:[#allocation8 + $0x30] sm:$0xff] %v494_v1  ;;  %v896_v2 = vpop.f32.mrb[8].mxu1 }
 0x217   :  { %v509_v3 = vadd.f32 %v896_v2, %v1222_v50  ;;  %v503_v4 = vpop.f32.mrb[9].mxu1 }
 0x218   :  { %v504_v5 = vadd.f32 %v1222_v50, %v503_v4 }
 0x219   :  { %631 = vst [vmem:[#allocation8 + $0x48] sm:$0xff] %v509_v3 }
 0x21a   :  { %630 = vst [vmem:[#allocation8 + $0x40] sm:$0xff] %v504_v5  ;;  %v899_v6 = vpop.f32.mrb[10].mxu1 }
 0x21b   :  { %v519_v7 = vadd.f32 %v899_v6, %v1222_v50  ;;  %v513_v8 = vpop.f32.mrb[11].mxu1 }
 0x21c   :  { %v514_v9 = vadd.f32 %v1222_v50, %v513_v8 }
 0x21d   :  { %633 = vst [vmem:[#allocation8 + $0x58] sm:$0xff] %v519_v7 }
 0x21e   :  { %632 = vst [vmem:[#allocation8 + $0x50] sm:$0xff] %v514_v9  ;;  %v902_v10 = vpop.f32.mrb[12].mxu1 }
 0x21f   :  { %v529_v11 = vadd.f32 %v902_v10, %v1222_v50  ;;  %v523_v12 = vpop.f32.mrb[13].mxu1 }
 0x220   :  { %v524_v13 = vadd.f32 %v1222_v50, %v523_v12 }
 0x221   :  { %635 = vst [vmem:[#allocation8 + $0x68] sm:$0xff] %v529_v11 }
 0x222   :  { %634 = vst [vmem:[#allocation8 + $0x60] sm:$0xff] %v524_v13  ;;  %v905_v14 = vpop.f32.mrb[14].mxu1 }
 0x223   :  { %v539_v15 = vadd.f32 %v905_v14, %v1222_v50  ;;  %v533_v17 = vpop.f32.mrb[15].mxu1 }
 0x224   :  { %v534_v18 = vadd.f32 %v1222_v50, %v533_v17 }
 0x225   :  { %637 = vst [vmem:[#allocation8 + $0x78] sm:$0xff] %v539_v15 }
 0x226   :  { %636 = vst [vmem:[#allocation8 + $0x70] sm:$0xff] %v534_v18  ;;  %v908_v19 = vpop.f32.mrb[16].mxu1 }
 0x227   :  { %v549_v20 = vadd.f32 %v908_v19, %v1222_v50  ;;  %v543_v21 = vpop.f32.mrb[17].mxu1 }
 0x228   :  { %v544_v22 = vadd.f32 %v1222_v50, %v543_v21 }
 0x229   :  { %639 = vst [vmem:[#allocation8 + $0x88] sm:$0xff] %v549_v20 }
 0x22a   :  { %638 = vst [vmem:[#allocation8 + $0x80] sm:$0xff] %v544_v22  ;;  %v911_v23 = vpop.f32.mrb[18].mxu1 }
 0x22b   :  { %v559_v24 = vadd.f32 %v911_v23, %v1222_v50  ;;  %v553_v25 = vpop.f32.mrb[19].mxu1 }
 0x22c   :  { %v554_v26 = vadd.f32 %v1222_v50, %v553_v25 }
 0x22d   :  { %641 = vst [vmem:[#allocation8 + $0x98] sm:$0xff] %v559_v24 }
 0x22e   :  { %640 = vst [vmem:[#allocation8 + $0x90] sm:$0xff] %v554_v26  ;;  %v914_v27 = vpop.f32.mrb[20].mxu1 }
 0x22f   :  { %v569_v28 = vadd.f32 %v914_v27, %v1222_v50  ;;  %v563_v29 = vpop.f32.mrb[21].mxu1 }
 0x230   :  { %v564_v30 = vadd.f32 %v1222_v50, %v563_v29 }
 0x231   :  { %643 = vst [vmem:[#allocation8 + $0xa8] sm:$0xff] %v569_v28 }
 0x232   :  { %642 = vst [vmem:[#allocation8 + $0xa0] sm:$0xff] %v564_v30  ;;  %v917_v31 = vpop.f32.mrb[22].mxu1 }
 0x233   :  { %v579_v32 = vadd.f32 %v917_v31, %v1222_v50  ;;  %v573_v33 = vpop.f32.mrb[23].mxu1 }
 0x234   :  { %v574_v34 = vadd.f32 %v1222_v50, %v573_v33 }
 0x235   :  { %645 = vst [vmem:[#allocation8 + $0xb8] sm:$0xff] %v579_v32 }
 0x236   :  { %644 = vst [vmem:[#allocation8 + $0xb0] sm:$0xff] %v574_v34  ;;  %v920_v35 = vpop.f32.mrb[24].mxu1 }
 0x237   :  { %v589_v36 = vadd.f32 %v920_v35, %v1222_v50  ;;  %v583_v37 = vpop.f32.mrb[25].mxu1 }
 0x238   :  { %v584_v38 = vadd.f32 %v1222_v50, %v583_v37 }
 0x239   :  { %647 = vst [vmem:[#allocation8 + $0xc8] sm:$0xff] %v589_v36 }
 0x23a   :  { %646 = vst [vmem:[#allocation8 + $0xc0] sm:$0xff] %v584_v38  ;;  %v923_v39 = vpop.f32.mrb[26].mxu1 }
 0x23b   :  { %v599_v40 = vadd.f32 %v923_v39, %v1222_v50  ;;  %v593_v41 = vpop.f32.mrb[27].mxu1 }
 0x23c   :  { %v594_v42 = vadd.f32 %v1222_v50, %v593_v41 }
 0x23d   :  { %649 = vst [vmem:[#allocation8 + $0xd8] sm:$0xff] %v599_v40 }
 0x23e   :  { %648 = vst [vmem:[#allocation8 + $0xd0] sm:$0xff] %v594_v42  ;;  %v926_v43 = vpop.f32.mrb[28].mxu1 }
 0x23f   :  { %v609_v44 = vadd.f32 %v926_v43, %v1222_v50  ;;  %v603_v45 = vpop.f32.mrb[29].mxu1 }
 0x240   :  { %v604_v46 = vadd.f32 %v1222_v50, %v603_v45 }
 0x241   :  { %651 = vst [vmem:[#allocation8 + $0xe8] sm:$0xff] %v609_v44 }
 0x242   :  { %650 = vst [vmem:[#allocation8 + $0xe0] sm:$0xff] %v604_v46  ;;  %v929_v47 = vpop.f32.mrb[30].mxu1 }
 0x243   :  { %v619_v48 = vadd.f32 %v929_v47, %v1222_v50  ;;  %v613_v49 = vpop.f32.mrb[31].mxu1 }
 0x244   :  { %v614_v51 = vadd.f32 %v1222_v50, %v613_v49 }
 0x245   :  { %653 = vst [vmem:[#allocation8 + $0xf8] sm:$0xff] %v619_v48 }
 0x246   :  { %652 = vst [vmem:[#allocation8 + $0xf0] sm:$0xff] %v614_v51 }
 0x247   :  { %1077 = shalt.err (!%p1074_p0)
}
 0x248   :  { %s1078_s12 = scalar_lea.hbm %s1276_s5, 4096 }
 0x249   :  { %p1079_p1 = scmp.ne.s32.totalorder %s1276_s5, %s1078_s12  ;;  %p1082_p2 = scmp.lt.u32.totalorder %s1078_s12, %s1276_s5 }
 0x24b   :  { %p1084_p3 = pnand %p1082_p2, %p1079_p1 }
 0x24d   :  { %1087 = shalt.err (!%p1084_p3)
}
 0x24e   :  { %665 = dma.vmem_to_hbm [thread:$0]  %s660_s8, 4096, %s1276_s5, [#allocation4], %s1096_s30, %s1096_s30, %s1097_s6  }
 0x24f   :  { %1092 = dma.done.wait [#allocation4], 4096  }
 0x250   :  { %1093 = vsyncadd [#allocation4], 4294963200 }
 0x251   :  { %669 = vsyncpa [#allocation3], 1 }
 0x252   :  { %670 = vsyncpa [#allocation6], 1 }
 0x253   :  { %671 = vsyncpa [#allocation4], 1 }

// kernel: tpu_custom_call.1
= control target key start
LH: loop header
LB: loop body
LE: loop exit
PB: predicated region body
PF: predicated region fallthrough
CT: control target
= control target key end

     0   :  { %10 = vsyncpa [#allocation3], 0  ;;  %s1271_s0 = inlined_call_operand.hbm [shape: f32[256,128], index: 0, kind: input, shape index: {}]   ;;  %s1272_s1 = inlined_call_operand.hbm [shape: f32[128,128], index: 1, kind: input, shape index: {}]   ;;  %s1273_s2 = inlined_call_operand.vmem [shape: f32[1,128], index: 2, kind: input, shape index: {}]   ;;  %s1274_s3 = inlined_call_operand.hbm [shape: f32[128,128], index: 3, kind: input, shape index: {}]   ;;  %s1275_s4 = inlined_call_operand.vmem [shape: f32[1,128], index: 4, kind: input, shape index: {}]   ;;  %s1276_s5 = inlined_call_operand.hbm [shape: f32[256,128], index: 5, kind: output, shape index: {}]  }
   0x1   :  { %11 = vsyncpa [#allocation6], 0 }
   0x2   :  { %12 = vsyncpa [#allocation4], 0  ;;  %s1094_s18 = smov [#allocation5]   ;;  %s1095_s20 = smov [#allocation2]  }
   0x3   :  { %s30_s19 = sshll.u32 %s1094_s18, 4  ;;  %s18_s21 = sshll.u32 %s1095_s20, 4  ;;  %s31_s19 = int_to_ptr.vmem [resolvable:$true] %s30_s19  ;;  %s1130_s21 = int_to_ptr.vmem [resolvable:$true] %s18_s21 }
   0x4   :  { %s1000_s24 = scalar_lea.hbm %s1272_s1, 2048 }
   0x5   :  { %p1001_p0 = scmp.ne.s32.totalorder %s1272_s1, %s1000_s24  ;;  %p1004_p1 = scmp.lt.u32.totalorder %s1000_s24, %s1272_s1 }
   0x7   :  { %p1006_p2 = pnand %p1004_p1, %p1001_p0 }
   0x9   :  { %1009 = shalt.err (!%p1006_p2)
}
   0xa   :  { %s1010_s29 = scalar_lea.vmem %s31_s19, 2048  ;;  %p1015_p4 = scmp.lt.s32.totalorder %s31_s19, %s31_s19 }
   0xb   :  { %p1011_p3 = scmp.ne.s32.totalorder %s31_s19, %s1010_s29  ;;  %p1016_p5 = scmp.lt.s32.totalorder %s1010_s29, %s1010_s29 }
   0xd   :  { %p1017_p6 = por %p1016_p5, %p1015_p4 }
   0xf   :  { %p1018_p7 = pnand %p1017_p6, %p1011_p3 }
  0x11   :  { %1021 = shalt.err (!%p1018_p7)
}
  0x12   :  { %s1096_s30 = smov 128   ;;  %s1097_s6 = smov 8  }
  0x13   :  { %36 = dma.hbm_to_vmem [thread:$0]  %s1272_s1, 2048, %s31_s19, [#allocation6], %s1096_s30, %s1096_s30, %s1097_s6  }
  0x14   :  { %s1022_s11 = scalar_lea.hbm %s1271_s0, 4096 }
  0x15   :  { %p1023_p8 = scmp.ne.s32.totalorder %s1271_s0, %s1022_s11  ;;  %p1026_p9 = scmp.lt.u32.totalorder %s1022_s11, %s1271_s0 }
  0x17   :  { %p1028_p10 = pnand %p1026_p9, %p1023_p8 }
  0x19   :  { %1031 = shalt.err (!%p1028_p10)
}
  0x1a   :  { %s1032_s16 = scalar_lea.vmem %s1130_s21, 4096  ;;  %p1037_p12 = scmp.lt.s32.totalorder %s1130_s21, %s1130_s21 }
  0x1b   :  { %p1033_p11 = scmp.ne.s32.totalorder %s1130_s21, %s1032_s16  ;;  %p1038_p13 = scmp.lt.s32.totalorder %s1032_s16, %s1032_s16 }
  0x1d   :  { %p1039_p0 = por %p1038_p13, %p1037_p12 }
  0x1f   :  { %p1040_p1 = pnand %p1039_p0, %p1033_p11 }
  0x21   :  { %1043 = shalt.err (!%p1040_p1)
}
  0x22   :  { %24 = dma.hbm_to_vmem [thread:$0]  %s1271_s0, 4096, %s1130_s21, [#allocation3], %s1096_s30, %s1096_s30, %s1097_s6  }
  0x23   :  { %s1098_s18 = smov [#allocation7]   ;;  %s1044_s23 = scalar_lea.hbm %s1274_s3, 2048 }
  0x24   :  { %s44_s19 = sshll.u32 %s1098_s18, 4  ;;  %p1045_p2 = scmp.ne.s32.totalorder %s1274_s3, %s1044_s23  ;;  %s45_s19 = int_to_ptr.vmem [resolvable:$true] %s44_s19 }
  0x25   :  { %p1048_p3 = scmp.lt.u32.totalorder %s1044_s23, %s1274_s3 }
  0x27   :  { %p1050_p4 = pnand %p1048_p3, %p1045_p2 }
  0x29   :  { %1053 = shalt.err (!%p1050_p4)
}
  0x2a   :  { %s1054_s28 = scalar_lea.vmem %s45_s19, 2048  ;;  %p1059_p6 = scmp.lt.s32.totalorder %s45_s19, %s45_s19 }
  0x2b   :  { %p1055_p5 = scmp.ne.s32.totalorder %s45_s19, %s1054_s28  ;;  %p1060_p7 = scmp.lt.s32.totalorder %s1054_s28, %s1054_s28 }
  0x2d   :  { %p1061_p8 = por %p1060_p7, %p1059_p6 }
  0x2f   :  { %p1062_p9 = pnand %p1061_p8, %p1055_p5 }
  0x31   :  { %1065 = shalt.err (!%p1062_p9)
}
  0x32   :  { %50 = dma.hbm_to_vmem [thread:$0]  %s1274_s3, 2048, %s45_s19, [#allocation6], %s1096_s30, %s1096_s30, %s1097_s6  }
  0x33   :  { %1088 = dma.done.wait [#allocation3], 4096  }
  0x34   :  { %1089 = vsyncadd [#allocation3], 4294963200 }
  0x35   :  { %1090 = dma.done.wait [#allocation6], 4096  }
  0x36   :  { %1091 = vsyncadd [#allocation6], 4294963200  ;;  %v94_v0 = vld [vmem:[#allocation5] sm:$0xff]  ;;  %v95_v1 = vld [vmem:[#allocation5 + $0x8] sm:$0xff] }
  0x37   :  { %v96_v2 = vld [vmem:[#allocation5 + $0x10] sm:$0xff]  ;;  %v930_v3 = vpack.c.bf16 %v95_v1, %v94_v0  ;;  %v97_v4 = vld [vmem:[#allocation5 + $0x18] sm:$0xff]  ;;  %v98_v6 = vld [vmem:[#allocation5 + $0x20] sm:$0xff] }
  0x38   :  { %v934_v5 = vpack.c.bf16 %v97_v4, %v96_v2  ;;  %v99_v7 = vld [vmem:[#allocation5 + $0x28] sm:$0xff]  ;;  %v62_v9 = vld [vmem:[#allocation2] sm:$0xff]  ;;  %v100_v10 = vld [vmem:[#allocation5 + $0x30] sm:$0xff] }
  0x39   :  { %931 = vmatprep.subr.bf16.mxu0 %v930_v3  ;;  %v938_v8 = vpack.c.bf16 %v99_v7, %v98_v6  ;;  %v101_v11 = vld [vmem:[#allocation5 + $0x38] sm:$0xff]  ;;  %802 = vmatprep.mubr.f32.mxu0 %v62_v9  ;;  %v102_v13 = vld [vmem:[#allocation5 + $0x40] sm:$0xff]  ;;  %v103_v14 = vld [vmem:[#allocation5 + $0x48] sm:$0xff] }
  0x3a   :  { %933 = vmatpush3.bf16.msra.mxu0 %v930_v3  ;;  %v942_v12 = vpack.c.bf16 %v101_v11, %v100_v10  ;;  %v946_v15 = vpack.c.bf16 %v103_v14, %v102_v13  ;;  %v104_v16 = vld [vmem:[#allocation5 + $0x50] sm:$0xff]  ;;  %v105_v17 = vld [vmem:[#allocation5 + $0x58] sm:$0xff]  ;;  %v374_v18 = vld [vmem:[#allocation7] sm:$0xff] }
  0x3b   :  { %935 = vmatprep.subr.bf16.mxu0 %v934_v5  ;;  %v375_v19 = vld [vmem:[#allocation7 + $0x8] sm:$0xff]  ;;  %v376_v20 = vld [vmem:[#allocation7 + $0x10] sm:$0xff]  ;;  %v950_v21 = vpack.c.bf16 %v105_v17, %v104_v16  ;;  %v106_v22 = vld [vmem:[#allocation5 + $0x60] sm:$0xff] }
  0x3c   :  { %v962_v23 = vpack.c.bf16 %v375_v19, %v374_v18  ;;  %v377_v24 = vld [vmem:[#allocation7 + $0x18] sm:$0xff]  ;;  %v107_v25 = vld [vmem:[#allocation5 + $0x68] sm:$0xff]  ;;  %v378_v27 = vld [vmem:[#allocation7 + $0x20] sm:$0xff] }
  0x3d   :  { %v966_v26 = vpack.c.bf16 %v377_v24, %v376_v20  ;;  %v379_v28 = vld [vmem:[#allocation7 + $0x28] sm:$0xff]  ;;  %v954_v29 = vpack.c.bf16 %v107_v25, %v106_v22  ;;  %v108_v30 = vld [vmem:[#allocation5 + $0x70] sm:$0xff]  ;;  %v109_v32 = vld [vmem:[#allocation5 + $0x78] sm:$0xff] }
  0x3e   :  { %937 = vmatpush3.bf16.msra.mxu0 %v934_v5  ;;  %963 = vmatprep.subr.bf16.mxu1 %v962_v23  ;;  %v970_v31 = vpack.c.bf16 %v379_v28, %v378_v27  ;;  %v380_v33 = vld [vmem:[#allocation7 + $0x30] sm:$0xff]  ;;  %v381_v34 = vld [vmem:[#allocation7 + $0x38] sm:$0xff]  ;;  %v958_v35 = vpack.c.bf16 %v109_v32, %v108_v30  ;;  %v382_v37 = vld [vmem:[#allocation7 + $0x40] sm:$0xff] }
  0x3f   :  { %939 = vmatprep.subr.bf16.mxu0 %v938_v8  ;;  %965 = vmatpush3.bf16.msra.mxu1 %v962_v23  ;;  %v974_v36 = vpack.c.bf16 %v381_v34, %v380_v33  ;;  %v383_v38 = vld [vmem:[#allocation7 + $0x48] sm:$0xff]  ;;  %v384_v40 = vld [vmem:[#allocation7 + $0x50] sm:$0xff]  ;;  %v385_v41 = vld [vmem:[#allocation7 + $0x58] sm:$0xff] }
  0x40   :  { %967 = vmatprep.subr.bf16.mxu1 %v966_v26  ;;  %v978_v39 = vpack.c.bf16 %v383_v38, %v382_v37  ;;  %v63_v42 = vld [vmem:[#allocation2 + $0x8] sm:$0xff]  ;;  %v64_v43 = vld [vmem:[#allocation2 + $0x10] sm:$0xff]  ;;  %v982_v44 = vpack.c.bf16 %v385_v41, %v384_v40  ;;  %v386_v45 = vld [vmem:[#allocation7 + $0x60] sm:$0xff] }
  0x41   :  { %v387_v46 = vld [vmem:[#allocation7 + $0x68] sm:$0xff]  ;;  %v65_v47 = vld [vmem:[#allocation2 + $0x18] sm:$0xff]  ;;  %v66_v48 = vld [vmem:[#allocation2 + $0x20] sm:$0xff] }
  0x42   :  { %941 = vmatpush3.bf16.msra.mxu0 %v938_v8  ;;  %v986_v49 = vpack.c.bf16 %v387_v46, %v386_v45  ;;  %v67_v50 = vld [vmem:[#allocation2 + $0x28] sm:$0xff]  ;;  %v68_v51 = vld [vmem:[#allocation2 + $0x30] sm:$0xff]  ;;  %v69_v52 = vld [vmem:[#allocation2 + $0x38] sm:$0xff] }
  0x43   :  { %943 = vmatprep.subr.bf16.mxu0 %v942_v12  ;;  %969 = vmatpush3.bf16.msra.mxu1 %v966_v26  ;;  %v70_v53 = vld [vmem:[#allocation2 + $0x40] sm:$0xff]  ;;  %v71_v54 = vld [vmem:[#allocation2 + $0x48] sm:$0xff]  ;;  %v72_v55 = vld [vmem:[#allocation2 + $0x50] sm:$0xff] }
  0x44   :  { %971 = vmatprep.subr.bf16.mxu1 %v970_v31  ;;  %v73_v56 = vld [vmem:[#allocation2 + $0x58] sm:$0xff]  ;;  %v74_v57 = vld [vmem:[#allocation2 + $0x60] sm:$0xff]  ;;  %v75_v58 = vld [vmem:[#allocation2 + $0x68] sm:$0xff] }
  0x45   :  { %v76_v59 = vld [vmem:[#allocation2 + $0x70] sm:$0xff]  ;;  %v77_v60 = vld [vmem:[#allocation2 + $0x78] sm:$0xff]  ;;  %v78_v61 = vld [vmem:[#allocation2 + $0x80] sm:$0xff] }
  0x46   :  { %945 = vmatpush3.bf16.msra.mxu0 %v942_v12  ;;  %v79_v62 = vld [vmem:[#allocation2 + $0x88] sm:$0xff]  ;;  %v80_v63 = vld [vmem:[#allocation2 + $0x90] sm:$0xff]  ;;  %v81_v0 = vld [vmem:[#allocation2 + $0x98] sm:$0xff] }
  0x47   :  { %947 = vmatprep.subr.bf16.mxu0 %v946_v15  ;;  %973 = vmatpush3.bf16.msra.mxu1 %v970_v31  ;;  %v82_v1 = vld [vmem:[#allocation2 + $0xa0] sm:$0xff]  ;;  %v83_v2 = vld [vmem:[#allocation2 + $0xa8] sm:$0xff]  ;;  %v84_v3 = vld [vmem:[#allocation2 + $0xb0] sm:$0xff] }
  0x48   :  { %975 = vmatprep.subr.bf16.mxu1 %v974_v36  ;;  %v85_v4 = vld [vmem:[#allocation2 + $0xb8] sm:$0xff]  ;;  %v86_v5 = vld [vmem:[#allocation2 + $0xc0] sm:$0xff]  ;;  %v87_v6 = vld [vmem:[#allocation2 + $0xc8] sm:$0xff] }
  0x49   :  { %v88_v7 = vld [vmem:[#allocation2 + $0xd0] sm:$0xff]  ;;  %v89_v8 = vld [vmem:[#allocation2 + $0xd8] sm:$0xff]  ;;  %v90_v9 = vld [vmem:[#allocation2 + $0xe0] sm:$0xff] }
  0x4a   :  { %949 = vmatpush3.bf16.msra.mxu0 %v946_v15  ;;  %v91_v10 = vld [vmem:[#allocation2 + $0xe8] sm:$0xff]  ;;  %v92_v11 = vld [vmem:[#allocation2 + $0xf0] sm:$0xff]  ;;  %v93_v12 = vld [vmem:[#allocation2 + $0xf8] sm:$0xff] }
  0x4b   :  { %951 = vmatprep.subr.bf16.mxu0 %v950_v21  ;;  %977 = vmatpush3.bf16.msra.mxu1 %v974_v36  ;;  %v388_v13 = vld [vmem:[#allocation7 + $0x70] sm:$0xff]  ;;  %v389_v14 = vld [vmem:[#allocation7 + $0x78] sm:$0xff]  ;;  %v1185_v16 = vld [vmem:[%s1273_s2] ss:$0 sm:$0xff] }
  0x4c   :  { %979 = vmatprep.subr.bf16.mxu1 %v978_v39  ;;  %v990_v15 = vpack.c.bf16 %v389_v14, %v388_v13 }
  0x4e   :  { %953 = vmatpush3.bf16.msra.mxu0 %v950_v21 }
  0x4f   :  { %955 = vmatprep.subr.bf16.mxu0 %v954_v29  ;;  %981 = vmatpush3.bf16.msra.mxu1 %v978_v39 }
  0x50   :  { %983 = vmatprep.subr.bf16.mxu1 %v982_v44 }
  0x52   :  { %957 = vmatpush3.bf16.msra.mxu0 %v954_v29 }
  0x53   :  { %959 = vmatprep.subr.bf16.mxu0 %v958_v35  ;;  %985 = vmatpush3.bf16.msra.mxu1 %v982_v44 }
  0x54   :  { %987 = vmatprep.subr.bf16.mxu1 %v986_v49 }
  0x56   :  { %961 = vmatpush3.bf16.msra.mxu0 %v958_v35 }
  0x57   :  { %989 = vmatpush3.bf16.msra.mxu1 %v986_v49 }
  0x58   :  { %991 = vmatprep.subr.bf16.mxu1 %v990_v15 }
  0x59   :  { %803 = vmatmul.mubr.f32.vlgmr.msra.gmra.mrb[0].mxu0 %v63_v42 }
  0x5a   :  { %805 = vmatprep.mubr.f32.mxu0 %v64_v43 }
  0x5b   :  { %993 = vmatpush3.bf16.msra.mxu1 %v990_v15 }
  0x5d   :  { %806 = vmatmul.mubr.f32.gmra.mrb[2].mxu0 %v65_v47 }
  0x5e   :  { %808 = vmatprep.mubr.f32.mxu0 %v66_v48 }
  0x61   :  { %809 = vmatmul.mubr.f32.gmra.mrb[4].mxu0 %v67_v50 }
  0x62   :  { %811 = vmatprep.mubr.f32.mxu0 %v68_v51 }
  0x65   :  { %812 = vmatmul.mubr.f32.gmra.mrb[6].mxu0 %v69_v52 }
  0x66   :  { %814 = vmatprep.mubr.f32.mxu0 %v70_v53 }
  0x69   :  { %815 = vmatmul.mubr.f32.gmra.mrb[8].mxu0 %v71_v54 }
  0x6a   :  { %817 = vmatprep.mubr.f32.mxu0 %v72_v55 }
  0x6d   :  { %818 = vmatmul.mubr.f32.gmra.mrb[10].mxu0 %v73_v56 }
  0x6e   :  { %820 = vmatprep.mubr.f32.mxu0 %v74_v57 }
  0x71   :  { %821 = vmatmul.mubr.f32.gmra.mrb[12].mxu0 %v75_v58 }
  0x72   :  { %823 = vmatprep.mubr.f32.mxu0 %v76_v59 }
  0x75   :  { %824 = vmatmul.mubr.f32.gmra.mrb[14].mxu0 %v77_v60 }
  0x76   :  { %826 = vmatprep.mubr.f32.mxu0 %v78_v61 }
  0x79   :  { %827 = vmatmul.mubr.f32.gmra.mrb[16].mxu0 %v79_v62 }
  0x7a   :  { %829 = vmatprep.mubr.f32.mxu0 %v80_v63 }
  0x7d   :  { %830 = vmatmul.mubr.f32.gmra.mrb[18].mxu0 %v81_v0 }
  0x7e   :  { %832 = vmatprep.mubr.f32.mxu0 %v82_v1 }
  0x81   :  { %833 = vmatmul.mubr.f32.gmra.mrb[20].mxu0 %v83_v2 }
  0x82   :  { %835 = vmatprep.mubr.f32.mxu0 %v84_v3 }
  0x85   :  { %836 = vmatmul.mubr.f32.gmra.mrb[22].mxu0 %v85_v4 }
  0x86   :  { %838 = vmatprep.mubr.f32.mxu0 %v86_v5 }
  0x89   :  { %839 = vmatmul.mubr.f32.gmra.mrb[24].mxu0 %v87_v6 }
  0x8a   :  { %841 = vmatprep.mubr.f32.mxu0 %v88_v7 }
  0x8d   :  { %842 = vmatmul.mubr.f32.gmra.mrb[26].mxu0 %v89_v8 }
  0x8e   :  { %844 = vmatprep.mubr.f32.mxu0 %v90_v9 }
  0x91   :  { %845 = vmatmul.mubr.f32.gmra.mrb[28].mxu0 %v91_v10 }
  0x92   :  { %847 = vmatprep.mubr.f32.mxu0 %v92_v11 }
  0x95   :  { %848 = vmatmul.mubr.f32.gmra.mrb[30].mxu0 %v93_v12 }
 0x12c   :  { %v804_v17 = vpop.f32.mrb[0].mxu0 }
 0x12d   :  { %v189_v18 = vadd.f32 %v804_v17, %v1185_v16  ;;  %v183_v19 = vpop.f32.mrb[1].mxu0 }
 0x12e   :  { %v184_v20 = vadd.f32 %v1185_v16, %v183_v19 }
 0x12f   :  { %v343_v23 = vmax.f32 %v189_v18, 0.0 }
 0x130   :  { %v807_v21 = vpop.f32.mrb[2].mxu0  ;;  %v342_v22 = vmax.f32 %v184_v20, 0.0 }
 0x131   :  { %v199_v24 = vadd.f32 %v807_v21, %v1185_v16  ;;  %v193_v25 = vpop.f32.mrb[3].mxu0 }
 0x132   :  { %v194_v26 = vadd.f32 %v1185_v16, %v193_v25  ;;  %882 = vmatprep.mubr.f32.mxu1 %v342_v22 }
 0x133   :  { %883 = vmatmul.mubr.f32.vlgmr.msra.gmra.mrb[0].mxu1 %v343_v23  ;;  %v345_v29 = vmax.f32 %v199_v24, 0.0 }
 0x134   :  { %v344_v27 = vmax.f32 %v194_v26, 0.0  ;;  %v810_v28 = vpop.f32.mrb[4].mxu0 }
 0x135   :  { %v209_v30 = vadd.f32 %v810_v28, %v1185_v16  ;;  %v203_v31 = vpop.f32.mrb[5].mxu0 }
 0x136   :  { %v204_v32 = vadd.f32 %v1185_v16, %v203_v31  ;;  %885 = vmatprep.mubr.f32.mxu1 %v344_v27 }
 0x137   :  { %886 = vmatmul.mubr.f32.gmra.mrb[2].mxu1 %v345_v29  ;;  %v347_v35 = vmax.f32 %v209_v30, 0.0 }
 0x138   :  { %v346_v33 = vmax.f32 %v204_v32, 0.0  ;;  %v813_v34 = vpop.f32.mrb[6].mxu0 }
 0x139   :  { %v219_v36 = vadd.f32 %v813_v34, %v1185_v16  ;;  %v213_v37 = vpop.f32.mrb[7].mxu0 }
 0x13a   :  { %v214_v38 = vadd.f32 %v1185_v16, %v213_v37  ;;  %888 = vmatprep.mubr.f32.mxu1 %v346_v33 }
 0x13b   :  { %889 = vmatmul.mubr.f32.gmra.mrb[4].mxu1 %v347_v35  ;;  %v349_v41 = vmax.f32 %v219_v36, 0.0 }
 0x13c   :  { %v348_v39 = vmax.f32 %v214_v38, 0.0  ;;  %v816_v40 = vpop.f32.mrb[8].mxu0 }
 0x13d   :  { %v229_v42 = vadd.f32 %v816_v40, %v1185_v16  ;;  %v223_v43 = vpop.f32.mrb[9].mxu0 }
 0x13e   :  { %v224_v44 = vadd.f32 %v1185_v16, %v223_v43  ;;  %891 = vmatprep.mubr.f32.mxu1 %v348_v39 }
 0x13f   :  { %892 = vmatmul.mubr.f32.gmra.mrb[6].mxu1 %v349_v41  ;;  %v351_v47 = vmax.f32 %v229_v42, 0.0 }
 0x140   :  { %v350_v45 = vmax.f32 %v224_v44, 0.0  ;;  %v819_v46 = vpop.f32.mrb[10].mxu0 }
 0x141   :  { %v239_v48 = vadd.f32 %v819_v46, %v1185_v16  ;;  %v233_v49 = vpop.f32.mrb[11].mxu0 }
 0x142   :  { %v234_v50 = vadd.f32 %v1185_v16, %v233_v49  ;;  %894 = vmatprep.mubr.f32.mxu1 %v350_v45 }
 0x143   :  { %895 = vmatmul.mubr.f32.gmra.mrb[8].mxu1 %v351_v47  ;;  %v353_v53 = vmax.f32 %v239_v48, 0.0 }
 0x144   :  { %v352_v51 = vmax.f32 %v234_v50, 0.0  ;;  %v822_v52 = vpop.f32.mrb[12].mxu0  ;;  %v1222_v50 = vld [vmem:[%s1275_s4] ss:$0 sm:$0xff]  ;;  %s1099_s4 = smov [#allocation8]  }
 0x145   :  { %v249_v54 = vadd.f32 %v822_v52, %v1185_v16  ;;  %v243_v55 = vpop.f32.mrb[13].mxu0  ;;  %s659_s8 = sshll.u32 %s1099_s4, 4  ;;  %s660_s8 = int_to_ptr.vmem [resolvable:$true] %s659_s8 }
 0x146   :  { %v244_v56 = vadd.f32 %v1185_v16, %v243_v55  ;;  %897 = vmatprep.mubr.f32.mxu1 %v352_v51  ;;  %s1066_s9 = scalar_lea.vmem %s660_s8, 4096  ;;  %p1071_p11 = scmp.lt.s32.totalorder %s660_s8, %s660_s8 }
 0x147   :  { %898 = vmatmul.mubr.f32.gmra.mrb[10].mxu1 %v353_v53  ;;  %v355_v59 = vmax.f32 %v249_v54, 0.0  ;;  %p1067_p10 = scmp.ne.s32.totalorder %s660_s8, %s1066_s9  ;;  %p1072_p12 = scmp.lt.s32.totalorder %s1066_s9, %s1066_s9 }
 0x148   :  { %v354_v57 = vmax.f32 %v244_v56, 0.0  ;;  %v825_v58 = vpop.f32.mrb[14].mxu0 }
 0x149   :  { %v259_v60 = vadd.f32 %v825_v58, %v1185_v16  ;;  %v253_v61 = vpop.f32.mrb[15].mxu0  ;;  %p1073_p13 = por %p1072_p12, %p1071_p11 }
 0x14a   :  { %v254_v62 = vadd.f32 %v1185_v16, %v253_v61  ;;  %900 = vmatprep.mubr.f32.mxu1 %v354_v57 }
 0x14b   :  { %901 = vmatmul.mubr.f32.gmra.mrb[12].mxu1 %v355_v59  ;;  %v357_v1 = vmax.f32 %v259_v60, 0.0  ;;  %p1074_p0 = pnand %p1073_p13, %p1067_p10 }
 0x14c   :  { %v356_v63 = vmax.f32 %v254_v62, 0.0  ;;  %v828_v0 = vpop.f32.mrb[16].mxu0 }
 0x14d   :  { %v269_v2 = vadd.f32 %v828_v0, %v1185_v16  ;;  %v263_v3 = vpop.f32.mrb[17].mxu0 }
 0x14e   :  { %v264_v4 = vadd.f32 %v1185_v16, %v263_v3  ;;  %903 = vmatprep.mubr.f32.mxu1 %v356_v63 }
 0x14f   :  { %904 = vmatmul.mubr.f32.gmra.mrb[14].mxu1 %v357_v1  ;;  %v359_v7 = vmax.f32 %v269_v2, 0.0 }
 0x150   :  { %v358_v5 = vmax.f32 %v264_v4, 0.0  ;;  %v831_v6 = vpop.f32.mrb[18].mxu0 }
 0x151   :  { %v279_v8 = vadd.f32 %v831_v6, %v1185_v16  ;;  %v273_v9 = vpop.f32.mrb[19].mxu0 }
 0x152   :  { %v274_v10 = vadd.f32 %v1185_v16, %v273_v9  ;;  %906 = vmatprep.mubr.f32.mxu1 %v358_v5 }
 0x153   :  { %907 = vmatmul.mubr.f32.gmra.mrb[16].mxu1 %v359_v7  ;;  %v361_v13 = vmax.f32 %v279_v8, 0.0 }
 0x154   :  { %v360_v11 = vmax.f32 %v274_v10, 0.0  ;;  %v834_v12 = vpop.f32.mrb[20].mxu0 }
 0x155   :  { %v289_v14 = vadd.f32 %v834_v12, %v1185_v16  ;;  %v283_v15 = vpop.f32.mrb[21].mxu0 }
 0x156   :  { %v284_v17 = vadd.f32 %v1185_v16, %v283_v15  ;;  %909 = vmatprep.mubr.f32.mxu1 %v360_v11 }
 0x157   :  { %910 = vmatmul.mubr.f32.gmra.mrb[18].mxu1 %v361_v13  ;;  %v363_v20 = vmax.f32 %v289_v14, 0.0 }
 0x158   :  { %v362_v18 = vmax.f32 %v284_v17, 0.0  ;;  %v837_v19 = vpop.f32.mrb[22].mxu0 }
 0x159   :  { %v299_v21 = vadd.f32 %v837_v19, %v1185_v16  ;;  %v293_v22 = vpop.f32.mrb[23].mxu0 }
 0x15a   :  { %v294_v23 = vadd.f32 %v1185_v16, %v293_v22  ;;  %912 = vmatprep.mubr.f32.mxu1 %v362_v18 }
 0x15b   :  { %913 = vmatmul.mubr.f32.gmra.mrb[20].mxu1 %v363_v20  ;;  %v365_v26 = vmax.f32 %v299_v21, 0.0 }
 0x15c   :  { %v364_v24 = vmax.f32 %v294_v23, 0.0  ;;  %v840_v25 = vpop.f32.mrb[24].mxu0 }
 0x15d   :  { %v309_v27 = vadd.f32 %v840_v25, %v1185_v16  ;;  %v303_v28 = vpop.f32.mrb[25].mxu0 }
 0x15e   :  { %v304_v29 = vadd.f32 %v1185_v16, %v303_v28  ;;  %915 = vmatprep.mubr.f32.mxu1 %v364_v24 }
 0x15f   :  { %916 = vmatmul.mubr.f32.gmra.mrb[22].mxu1 %v365_v26  ;;  %v367_v32 = vmax.f32 %v309_v27, 0.0 }
 0x160   :  { %v366_v30 = vmax.f32 %v304_v29, 0.0  ;;  %v843_v31 = vpop.f32.mrb[26].mxu0 }
 0x161   :  { %v319_v33 = vadd.f32 %v843_v31, %v1185_v16  ;;  %v313_v34 = vpop.f32.mrb[27].mxu0 }
 0x162   :  { %v314_v35 = vadd.f32 %v1185_v16, %v313_v34  ;;  %918 = vmatprep.mubr.f32.mxu1 %v366_v30 }
 0x163   :  { %919 = vmatmul.mubr.f32.gmra.mrb[24].mxu1 %v367_v32  ;;  %v369_v38 = vmax.f32 %v319_v33, 0.0 }
 0x164   :  { %v368_v36 = vmax.f32 %v314_v35, 0.0  ;;  %v846_v37 = vpop.f32.mrb[28].mxu0 }
 0x165   :  { %v329_v39 = vadd.f32 %v846_v37, %v1185_v16  ;;  %v323_v40 = vpop.f32.mrb[29].mxu0 }
 0x166   :  { %v324_v41 = vadd.f32 %v1185_v16, %v323_v40  ;;  %921 = vmatprep.mubr.f32.mxu1 %v368_v36 }
 0x167   :  { %922 = vmatmul.mubr.f32.gmra.mrb[26].mxu1 %v369_v38  ;;  %v371_v44 = vmax.f32 %v329_v39, 0.0 }
 0x168   :  { %v370_v42 = vmax.f32 %v324_v41, 0.0  ;;  %v849_v43 = vpop.f32.mrb[30].mxu0 }
 0x169   :  { %v339_v45 = vadd.f32 %v849_v43, %v1185_v16  ;;  %v333_v46 = vpop.f32.mrb[31].mxu0 }
 0x16a   :  { %v334_v47 = vadd.f32 %v1185_v16, %v333_v46  ;;  %924 = vmatprep.mubr.f32.mxu1 %v370_v42 }
 0x16b   :  { %925 = vmatmul.mubr.f32.gmra.mrb[28].mxu1 %v371_v44  ;;  %v373_v49 = vmax.f32 %v339_v45, 0.0 }
 0x16c   :  { %v372_v48 = vmax.f32 %v334_v47, 0.0 }
 0x16e   :  { %927 = vmatprep.mubr.f32.mxu1 %v372_v48 }
 0x16f   :  { %928 = vmatmul.mubr.f32.gmra.mrb[30].mxu1 %v373_v49 }
 0x206   :  { %v884_v51 = vpop.f32.mrb[0].mxu1 }
 0x207   :  { %v469_v52 = vadd.f32 %v884_v51, %v1222_v50  ;;  %v463_v53 = vpop.f32.mrb[1].mxu1 }
 0x208   :  { %v464_v54 = vadd.f32 %v1222_v50, %v463_v53 }
 0x209   :  { %623 = vst [vmem:[#allocation8 + $0x8] sm:$0xff] %v469_v52 }
 0x20a   :  { %622 = vst [vmem:[#allocation8] sm:$0xff] %v464_v54  ;;  %v887_v16 = vpop.f32.mrb[2].mxu1 }
 0x20b   :  { %v479_v55 = vadd.f32 %v887_v16, %v1222_v50  ;;  %v473_v56 = vpop.f32.mrb[3].mxu1 }
 0x20c   :  { %v474_v57 = vadd.f32 %v1222_v50, %v473_v56 }
 0x20d   :  { %625 = vst [vmem:[#allocation8 + $0x18] sm:$0xff] %v479_v55 }
 0x20e   :  { %624 = vst [vmem:[#allocation8 + $0x10] sm:$0xff] %v474_v57  ;;  %v890_v58 = vpop.f32.mrb[4].mxu1 }
 0x20f   :  { %v489_v59 = vadd.f32 %v890_v58, %v1222_v50  ;;  %v483_v60 = vpop.f32.mrb[5].mxu1 }
 0x210   :  { %v484_v61 = vadd.f32 %v1222_v50, %v483_v60 }
 0x211   :  { %627 = vst [vmem:[#allocation8 + $0x28] sm:$0xff] %v489_v59 }
 0x212   :  { %626 = vst [vmem:[#allocation8 + $0x20] sm:$0xff] %v484_v61  ;;  %v893_v62 = vpop.f32.mrb[6].mxu1 }
 0x213   :  { %v499_v63 = vadd.f32 %v893_v62, %v1222_v50  ;;  %v493_v0 = vpop.f32.mrb[7].mxu1 }
 0x214   :  { %v494_v1 = vadd.f32 %v1222_v50, %v493_v0 }
 0x215   :  { %629 = vst [vmem:[#allocation8 + $0x38] sm:$0xff] %v499_v63 }
 0x216   :  { %628 = vst [vmem:[#allocation8 + $0x30] sm:$0xff] %v494_v1  ;;  %v896_v2 = vpop.f32.mrb[8].mxu1 }
 0x217   :  { %v509_v3 = vadd.f32 %v896_v2, %v1222_v50  ;;  %v503_v4 = vpop.f32.mrb[9].mxu1 }
 0x218   :  { %v504_v5 = vadd.f32 %v1222_v50, %v503_v4 }
 0x219   :  { %631 = vst [vmem:[#allocation8 + $0x48] sm:$0xff] %v509_v3 }
 0x21a   :  { %630 = vst [vmem:[#allocation8 + $0x40] sm:$0xff] %v504_v5  ;;  %v899_v6 = vpop.f32.mrb[10].mxu1 }
 0x21b   :  { %v519_v7 = vadd.f32 %v899_v6, %v1222_v50  ;;  %v513_v8 = vpop.f32.mrb[11].mxu1 }
 0x21c   :  { %v514_v9 = vadd.f32 %v1222_v50, %v513_v8 }
 0x21d   :  { %633 = vst [vmem:[#allocation8 + $0x58] sm:$0xff] %v519_v7 }
 0x21e   :  { %632 = vst [vmem:[#allocation8 + $0x50] sm:$0xff] %v514_v9  ;;  %v902_v10 = vpop.f32.mrb[12].mxu1 }
 0x21f   :  { %v529_v11 = vadd.f32 %v902_v10, %v1222_v50  ;;  %v523_v12 = vpop.f32.mrb[13].mxu1 }
 0x220   :  { %v524_v13 = vadd.f32 %v1222_v50, %v523_v12 }
 0x221   :  { %635 = vst [vmem:[#allocation8 + $0x68] sm:$0xff] %v529_v11 }
 0x222   :  { %634 = vst [vmem:[#allocation8 + $0x60] sm:$0xff] %v524_v13  ;;  %v905_v14 = vpop.f32.mrb[14].mxu1 }
 0x223   :  { %v539_v15 = vadd.f32 %v905_v14, %v1222_v50  ;;  %v533_v17 = vpop.f32.mrb[15].mxu1 }
 0x224   :  { %v534_v18 = vadd.f32 %v1222_v50, %v533_v17 }
 0x225   :  { %637 = vst [vmem:[#allocation8 + $0x78] sm:$0xff] %v539_v15 }
 0x226   :  { %636 = vst [vmem:[#allocation8 + $0x70] sm:$0xff] %v534_v18  ;;  %v908_v19 = vpop.f32.mrb[16].mxu1 }
 0x227   :  { %v549_v20 = vadd.f32 %v908_v19, %v1222_v50  ;;  %v543_v21 = vpop.f32.mrb[17].mxu1 }
 0x228   :  { %v544_v22 = vadd.f32 %v1222_v50, %v543_v21 }
 0x229   :  { %639 = vst [vmem:[#allocation8 + $0x88] sm:$0xff] %v549_v20 }
 0x22a   :  { %638 = vst [vmem:[#allocation8 + $0x80] sm:$0xff] %v544_v22  ;;  %v911_v23 = vpop.f32.mrb[18].mxu1 }
 0x22b   :  { %v559_v24 = vadd.f32 %v911_v23, %v1222_v50  ;;  %v553_v25 = vpop.f32.mrb[19].mxu1 }
 0x22c   :  { %v554_v26 = vadd.f32 %v1222_v50, %v553_v25 }
 0x22d   :  { %641 = vst [vmem:[#allocation8 + $0x98] sm:$0xff] %v559_v24 }
 0x22e   :  { %640 = vst [vmem:[#allocation8 + $0x90] sm:$0xff] %v554_v26  ;;  %v914_v27 = vpop.f32.mrb[20].mxu1 }
 0x22f   :  { %v569_v28 = vadd.f32 %v914_v27, %v1222_v50  ;;  %v563_v29 = vpop.f32.mrb[21].mxu1 }
 0x230   :  { %v564_v30 = vadd.f32 %v1222_v50, %v563_v29 }
 0x231   :  { %643 = vst [vmem:[#allocation8 + $0xa8] sm:$0xff] %v569_v28 }
 0x232   :  { %642 = vst [vmem:[#allocation8 + $0xa0] sm:$0xff] %v564_v30  ;;  %v917_v31 = vpop.f32.mrb[22].mxu1 }
 0x233   :  { %v579_v32 = vadd.f32 %v917_v31, %v1222_v50  ;;  %v573_v33 = vpop.f32.mrb[23].mxu1 }
 0x234   :  { %v574_v34 = vadd.f32 %v1222_v50, %v573_v33 }
 0x235   :  { %645 = vst [vmem:[#allocation8 + $0xb8] sm:$0xff] %v579_v32 }
 0x236   :  { %644 = vst [vmem:[#allocation8 + $0xb0] sm:$0xff] %v574_v34  ;;  %v920_v35 = vpop.f32.mrb[24].mxu1 }
 0x237   :  { %v589_v36 = vadd.f32 %v920_v35, %v1222_v50  ;;  %v583_v37 = vpop.f32.mrb[25].mxu1 }
 0x238   :  { %v584_v38 = vadd.f32 %v1222_v50, %v583_v37 }
 0x239   :  { %647 = vst [vmem:[#allocation8 + $0xc8] sm:$0xff] %v589_v36 }
 0x23a   :  { %646 = vst [vmem:[#allocation8 + $0xc0] sm:$0xff] %v584_v38  ;;  %v923_v39 = vpop.f32.mrb[26].mxu1 }
 0x23b   :  { %v599_v40 = vadd.f32 %v923_v39, %v1222_v50  ;;  %v593_v41 = vpop.f32.mrb[27].mxu1 }
 0x23c   :  { %v594_v42 = vadd.f32 %v1222_v50, %v593_v41 }
 0x23d   :  { %649 = vst [vmem:[#allocation8 + $0xd8] sm:$0xff] %v599_v40 }
 0x23e   :  { %648 = vst [vmem:[#allocation8 + $0xd0] sm:$0xff] %v594_v42  ;;  %v926_v43 = vpop.f32.mrb[28].mxu1 }
 0x23f   :  { %v609_v44 = vadd.f32 %v926_v43, %v1222_v50  ;;  %v603_v45 = vpop.f32.mrb[29].mxu1 }
 0x240   :  { %v604_v46 = vadd.f32 %v1222_v50, %v603_v45 }
 0x241   :  { %651 = vst [vmem:[#allocation8 + $0xe8] sm:$0xff] %v609_v44 }
 0x242   :  { %650 = vst [vmem:[#allocation8 + $0xe0] sm:$0xff] %v604_v46  ;;  %v929_v47 = vpop.f32.mrb[30].mxu1 }
 0x243   :  { %v619_v48 = vadd.f32 %v929_v47, %v1222_v50  ;;  %v613_v49 = vpop.f32.mrb[31].mxu1 }
 0x244   :  { %v614_v51 = vadd.f32 %v1222_v50, %v613_v49 }
 0x245   :  { %653 = vst [vmem:[#allocation8 + $0xf8] sm:$0xff] %v619_v48 }
 0x246   :  { %652 = vst [vmem:[#allocation8 + $0xf0] sm:$0xff] %v614_v51 }
 0x247   :  { %1077 = shalt.err (!%p1074_p0)
}
 0x248   :  { %s1078_s12 = scalar_lea.hbm %s1276_s5, 4096 }
 0x249   :  { %p1079_p1 = scmp.ne.s32.totalorder %s1276_s5, %s1078_s12  ;;  %p1082_p2 = scmp.lt.u32.totalorder %s1078_s12, %s1276_s5 }
 0x24b   :  { %p1084_p3 = pnand %p1082_p2, %p1079_p1 }
 0x24d   :  { %1087 = shalt.err (!%p1084_p3)
}
 0x24e   :  { %665 = dma.vmem_to_hbm [thread:$0]  %s660_s8, 4096, %s1276_s5, [#allocation4], %s1096_s30, %s1096_s30, %s1097_s6  }
 0x24f   :  { %1092 = dma.done.wait [#allocation4], 4096  }
 0x250   :  { %1093 = vsyncadd [#allocation4], 4294963200 }
 0x251   :  { %669 = vsyncpa [#allocation3], 1 }
 0x252   :  { %670 = vsyncpa [#allocation6], 1 }
 0x253   :  { %671 = vsyncpa [#allocation4], 1 }

</bundles_post_ra>
